<compile_context>
chip_gen: v7x
topology: tpu7x:2x2x1
jax: 0.10.0
libtpu: 0.0.40
codegen_flags: <defaults>
</compile_context>

<pallas_src>
import functools

import jax
import jax.numpy as jnp
from jax import lax
from jax.experimental import pallas as pl
from jax.experimental.pallas import tpu as pltpu


def _se_basic_block_kernel(x_ref, w1_ref, w2_ref, masks_ref, consts_ref,
                           o_ref, *, H, W, atrous, Cr):
    """One batch element.  x_ref/o_ref: (C, H*W) f32, HW on the lane axis.

    w1_ref / w2_ref : (C, 9*C) bf16 im2col conv weights, BN scale pre-folded.
    masks_ref       : (8, HW) f32 border-validity masks for off-center taps.
    consts_ref      : (C, 2+2*Cr) f32 packed [bn1 bias | bn2 bias | fc1^T | fc2].
    """
    HW = H * W
    x = x_ref[...]                                   # (C, HW) f32

    b1 = consts_ref[:, 0:1]                          # (C, 1)
    b2 = consts_ref[:, 1:2]                          # (C, 1)
    fw1t = consts_ref[:, 2:2 + Cr]                   # (C, Cr)  == fc1_w.T
    fw2 = consts_ref[:, 2 + Cr:2 + 2 * Cr]           # (C, Cr)  == fc2_w

    def im2col(inp):
        """(C, HW) -> (9*C, HW): 9 lane-rolled, border-masked copies of inp."""
        parts = []
        m = 0
        for dy in (-atrous, 0, atrous):
            for dx in (-atrous, 0, atrous):
                if dy == 0 and dx == 0:
                    parts.append(inp)
                else:
                    # shifted[:, p] = inp[:, p + dy*W + dx]  (wraps masked off)
                    shift = (-(dy * W + dx)) % HW            # static, >= 0
                    rolled = pltpu.roll(inp, shift, axis=1)  # XLU lane rotate
                    parts.append(rolled * masks_ref[m:m + 1, :])
                    m += 1
        return jnp.concatenate(parts, axis=0)        # (9*C, HW) f32

    def conv3x3(inp, w_ref):
        patches = im2col(inp).astype(jnp.bfloat16)   # bf16 MXU operand
        return jnp.dot(w_ref[...], patches,
                       preferred_element_type=jnp.float32)   # (C, HW) f32

    # conv1 -> (folded) bn1 -> relu
    h = jnp.maximum(conv3x3(x, w1_ref) + b1, 0.0)
    # conv2 -> (folded) bn2
    h = conv3x3(h, w2_ref) + b2

    # ---- SE layer: squeeze (global avg pool) + excitation on VPU/XLU -------
    pooled = jnp.mean(h, axis=1, keepdims=True)                       # (C, 1)
    hidden = jnp.maximum(jnp.sum(fw1t * pooled, axis=0, keepdims=True), 0.0)
    gate = jax.nn.sigmoid(jnp.sum(fw2 * hidden, axis=1, keepdims=True))  # (C,1)

    # per-channel gate, residual add, final ReLU: single lane-dense store.
    o_ref[...] = jnp.maximum(h * gate + x, 0.0)


def se_basic_block_pallas(x, conv1_w, bn1_g, bn1_b, bn1_m, bn1_v,
                          conv2_w, bn2_g, bn2_b, bn2_m, bn2_v,
                          fc1_w, fc2_w, *, eps=1e-5, atrous=1):
    """x: (B, C, H, W) f32.  conv*_w: (C, C, 3, 3) torch OIHW (bias=False).
    bn*_{g,b,m,v}: (C,) gamma/beta/running_mean/running_var (eval mode).
    fc1_w: (C//r, C), fc2_w: (C, C//r)  (torch nn.Linear weight layouts)."""
    B, C, H, W = x.shape
    HW = H * W
    Cr = fc1_w.shape[0]

    # Fold eval-mode BN: bn(conv(x)) = conv_with_scaled_weights(x) + bias.
    scale1 = bn1_g / jnp.sqrt(bn1_v + eps)
    bias1 = (bn1_b - bn1_m * scale1).reshape(C, 1).astype(jnp.float32)
    scale2 = bn2_g / jnp.sqrt(bn2_v + eps)
    bias2 = (bn2_b - bn2_m * scale2).reshape(C, 1).astype(jnp.float32)

    # im2col weight layout: w[o, t*Cin + i] = conv_w[o, i, ky, kx], t = ky*3+kx
    # (matches the tap order the kernel stacks patches in).  BN scale folded,
    # cast to bf16 (single-pass MXU operands; the kernel accumulates in f32).
    def im2col_w(w, scale):
        w = jnp.transpose(w, (0, 2, 3, 1)).reshape(C, 9 * C)
        return (scale.reshape(C, 1) * w).astype(jnp.bfloat16)

    w1 = im2col_w(conv1_w, scale1)
    w2 = im2col_w(conv2_w, scale2)

    # Border-validity masks for the 8 off-center taps (input-independent).
    yy, xx = jnp.meshgrid(jnp.arange(H), jnp.arange(W), indexing="ij")
    mask_list = []
    for dy in (-atrous, 0, atrous):
        for dx in (-atrous, 0, atrous):
            if dy == 0 and dx == 0:
                continue
            valid = ((yy + dy) >= 0) & ((yy + dy) < H) & \
                    ((xx + dx) >= 0) & ((xx + dx) < W)
            mask_list.append(valid.reshape(HW))
    masks = jnp.stack(mask_list).astype(jnp.float32)           # (8, HW)

    # Pack small per-channel constants into one resident array:
    #   [bn1 bias | bn2 bias | fc1^T (C,Cr) | fc2 (C,Cr)]
    consts = jnp.concatenate(
        [bias1, bias2, fc1_w.T.astype(jnp.float32), fc2_w.astype(jnp.float32)],
        axis=1)                                                # (C, 2+2*Cr)

    x_flat = x.reshape(B, C, HW).astype(jnp.float32)

    kernel = functools.partial(_se_basic_block_kernel, H=H, W=W,
                               atrous=atrous, Cr=Cr)

    flops = B * 2 * (2 * C * (9 * C) * HW)          # two conv matmuls / image
    bytes_accessed = (x_flat.size * 4 + B * C * HW * 4 + w1.size * 2 +
                      w2.size * 2 + masks.size * 4 + consts.size * 4)

    out_flat = pl.pallas_call(
        kernel,
        out_shape=jax.ShapeDtypeStruct((B, C, HW), jnp.float32),
        grid_spec=pltpu.PrefetchScalarGridSpec(
            num_scalar_prefetch=0,
            grid=(B,),
            in_specs=[
                pl.BlockSpec((None, C, HW), lambda b: (b, 0, 0)),    # x (per-image)
                pl.BlockSpec((C, 9 * C), lambda b: (0, 0)),          # conv1 weights (resident)
                pl.BlockSpec((C, 9 * C), lambda b: (0, 0)),          # conv2 weights (resident)
                pl.BlockSpec((8, HW), lambda b: (0, 0)),             # border masks
                pl.BlockSpec((C, 2 + 2 * Cr), lambda b: (0, 0)),     # packed bias/SE consts
            ],
            out_specs=pl.BlockSpec((None, C, HW), lambda b: (b, 0, 0)),
        ),
        compiler_params=pltpu.CompilerParams(
            dimension_semantics=("parallel",)),
        cost_estimate=pl.CostEstimate(flops=flops,
                                      transcendentals=B * C,
                                      bytes_accessed=bytes_accessed),
    )(x_flat, w1, w2, masks, consts)

    return out_flat.reshape(B, C, H, W)


def se_basic_block_ref(x, conv1_w, bn1_g, bn1_b, bn1_m, bn1_v,
                       conv2_w, bn2_g, bn2_b, bn2_m, bn2_v,
                       fc1_w, fc2_w, *, eps=1e-5, atrous=1):
    """Pure-JAX f32 reference mirroring the PyTorch SEBasicBlock (eval mode)."""
    def conv(inp, w):
        return lax.conv_general_dilated(
            inp, w, window_strides=(1, 1),
            padding=[(atrous, atrous), (atrous, atrous)],
            rhs_dilation=(atrous, atrous),
            dimension_numbers=("NCHW", "OIHW", "NCHW"),
            precision=lax.Precision.HIGHEST)

    def bn(inp, g, b, m, v):
        sc = (g / jnp.sqrt(v + eps))[None, :, None, None]
        return (inp - m[None, :, None, None]) * sc + b[None, :, None, None]

    h = jax.nn.relu(bn(conv(x, conv1_w), bn1_g, bn1_b, bn1_m, bn1_v))
    h = bn(conv(h, conv2_w), bn2_g, bn2_b, bn2_m, bn2_v)
    # SE layer
    p = jnp.mean(h, axis=(2, 3))                           # (B, C)
    e = jax.nn.relu(p @ fc1_w.T)                           # (B, Cr)
    s = jax.nn.sigmoid(e @ fc2_w.T)                        # (B, C)
    h = h * s[:, :, None, None]
    return jax.nn.relu(h + x)


if __name__ == "__main__":
    # Default SEBasicBlock config: inplanes == planes, stride=1, atrous=1,
    # downsample=None, reduction=16.  channel=32 -> SE hidden = 2.
    B, C, H, W = 2, 32, 16, 16
    reduction = 16
    Cr = max(C // reduction, 1)

    key = jax.random.PRNGKey(0)
    ks = jax.random.split(key, 13)
    x = jax.random.normal(ks[0], (B, C, H, W), dtype=jnp.float32)
    conv1_w = jax.random.normal(ks[1], (C, C, 3, 3), dtype=jnp.float32) * 0.1
    conv2_w = jax.random.normal(ks[2], (C, C, 3, 3), dtype=jnp.float32) * 0.1
    bn1_g = jax.random.uniform(ks[3], (C,), jnp.float32, 0.5, 1.5)
    bn1_b = jax.random.normal(ks[4], (C,), dtype=jnp.float32) * 0.1
    bn1_m = jax.random.normal(ks[5], (C,), dtype=jnp.float32) * 0.1
    bn1_v = jax.random.uniform(ks[6], (C,), jnp.float32, 0.5, 1.5)
    bn2_g = jax.random.uniform(ks[7], (C,), jnp.float32, 0.5, 1.5)
    bn2_b = jax.random.normal(ks[8], (C,), dtype=jnp.float32) * 0.1
    bn2_m = jax.random.normal(ks[9], (C,), dtype=jnp.float32) * 0.1
    bn2_v = jax.random.uniform(ks[10], (C,), jnp.float32, 0.5, 1.5)
    fc1_w = jax.random.normal(ks[11], (Cr, C), dtype=jnp.float32) * 0.2
    fc2_w = jax.random.normal(ks[12], (C, Cr), dtype=jnp.float32) * 0.2

    out = se_basic_block_pallas(x, conv1_w, bn1_g, bn1_b, bn1_m, bn1_v,
                                conv2_w, bn2_g, bn2_b, bn2_m, bn2_v,
                                fc1_w, fc2_w)
    out = jax.block_until_ready(out)

    ref = se_basic_block_ref(x, conv1_w, bn1_g, bn1_b, bn1_m, bn1_v,
                             conv2_w, bn2_g, bn2_b, bn2_m, bn2_v,
                             fc1_w, fc2_w)
    assert out.shape == (B, C, H, W)
    max_err = float(jnp.max(jnp.abs(out - ref)))
    # bf16 MXU operands (f32 accumulate) vs. an exact-f32 reference: tolerance
    # widened accordingly (observed error is O(1e-2) abs on O(1) outputs).
    assert jnp.allclose(out, ref, atol=2e-2, rtol=2e-2), \
        f"max abs err {max_err:.3e}"

    print("KERNEL_OK")
</pallas_src>

<mosaic_0001>
module attributes {stable_mosaic.version = 11 : i64} {
  func.func @_se_basic_block_kernel(%arg0: i32, %arg1: memref<1x32x256xf32, #tpu.memory_space<vmem>>, %arg2: memref<32x288xbf16, #tpu.memory_space<vmem>>, %arg3: memref<32x288xbf16, #tpu.memory_space<vmem>>, %arg4: memref<8x256xf32, #tpu.memory_space<vmem>>, %arg5: memref<32x6xf32, #tpu.memory_space<vmem>>, %arg6: memref<1x32x256xf32, #tpu.memory_space<vmem>>) attributes {dimension_semantics = [#tpu.dimension_semantics<parallel>], iteration_bounds = array<i64: 2>, scalar_prefetch = 0 : i64, scratch_operands = 0 : i64, tpu.core_type = #tpu.core_type<tc>, window_params = [{transform_indices = @transform_0, window_bounds = array<i64: 1, 32, 256>}, {pipeline_mode = #tpu.pipeline_mode<synchronous>, transform_indices = @transform_1, window_bounds = array<i64: 32, 288>}, {pipeline_mode = #tpu.pipeline_mode<synchronous>, transform_indices = @transform_2, window_bounds = array<i64: 32, 288>}, {pipeline_mode = #tpu.pipeline_mode<synchronous>, transform_indices = @transform_3, window_bounds = array<i64: 8, 256>}, {pipeline_mode = #tpu.pipeline_mode<synchronous>, transform_indices = @transform_4, window_bounds = array<i64: 32, 6>}, {transform_indices = @transform_5, window_bounds = array<i64: 1, 32, 256>}]} {
    %c0 = arith.constant 0 : index
    %c0_0 = arith.constant 0 : index
    %c0_1 = arith.constant 0 : index
    %0 = vector.load %arg1[%c0, %c0_0, %c0_1] : memref<1x32x256xf32, #tpu.memory_space<vmem>>, vector<1x32x256xf32>
    %1 = vector.shape_cast %0 : vector<1x32x256xf32> to vector<32x256xf32>
    %c0_2 = arith.constant 0 : index
    %c0_3 = arith.constant 0 : index
    %2 = vector.load %arg5[%c0_2, %c0_3] : memref<32x6xf32, #tpu.memory_space<vmem>>, vector<32x1xf32>
    %c0_4 = arith.constant 0 : index
    %c1 = arith.constant 1 : index
    %3 = vector.load %arg5[%c0_4, %c1] : memref<32x6xf32, #tpu.memory_space<vmem>>, vector<32x1xf32>
    %c0_5 = arith.constant 0 : index
    %c2 = arith.constant 2 : index
    %4 = vector.load %arg5[%c0_5, %c2] : memref<32x6xf32, #tpu.memory_space<vmem>>, vector<32x2xf32>
    %c0_6 = arith.constant 0 : index
    %c4 = arith.constant 4 : index
    %5 = vector.load %arg5[%c0_6, %c4] : memref<32x6xf32, #tpu.memory_space<vmem>>, vector<32x2xf32>
    %c17_i32 = arith.constant 17 : i32
    %6 = tpu.dynamic_rotate %1 by %c17_i32 dim 1 : vector<32x256xf32>, i32 -> vector<32x256xf32>
    %c0_7 = arith.constant 0 : index
    %c0_8 = arith.constant 0 : index
    %7 = vector.load %arg4[%c0_7, %c0_8] : memref<8x256xf32, #tpu.memory_space<vmem>>, vector<1x256xf32>
    %8 = vector.broadcast %7 : vector<1x256xf32> to vector<32x256xf32>
    %9 = arith.mulf %6, %8 : vector<32x256xf32>
    %c16_i32 = arith.constant 16 : i32
    %10 = tpu.dynamic_rotate %1 by %c16_i32 dim 1 : vector<32x256xf32>, i32 -> vector<32x256xf32>
    %c1_9 = arith.constant 1 : index
    %c0_10 = arith.constant 0 : index
    %11 = vector.load %arg4[%c1_9, %c0_10] : memref<8x256xf32, #tpu.memory_space<vmem>>, vector<1x256xf32>
    %12 = vector.broadcast %11 : vector<1x256xf32> to vector<32x256xf32>
    %13 = arith.mulf %10, %12 : vector<32x256xf32>
    %c15_i32 = arith.constant 15 : i32
    %14 = tpu.dynamic_rotate %1 by %c15_i32 dim 1 : vector<32x256xf32>, i32 -> vector<32x256xf32>
    %c2_11 = arith.constant 2 : index
    %c0_12 = arith.constant 0 : index
    %15 = vector.load %arg4[%c2_11, %c0_12] : memref<8x256xf32, #tpu.memory_space<vmem>>, vector<1x256xf32>
    %16 = vector.broadcast %15 : vector<1x256xf32> to vector<32x256xf32>
    %17 = arith.mulf %14, %16 : vector<32x256xf32>
    %c1_i32 = arith.constant 1 : i32
    %18 = tpu.dynamic_rotate %1 by %c1_i32 dim 1 : vector<32x256xf32>, i32 -> vector<32x256xf32>
    %c3 = arith.constant 3 : index
    %c0_13 = arith.constant 0 : index
    %19 = vector.load %arg4[%c3, %c0_13] : memref<8x256xf32, #tpu.memory_space<vmem>>, vector<1x256xf32>
    %20 = vector.broadcast %19 : vector<1x256xf32> to vector<32x256xf32>
    %21 = arith.mulf %18, %20 : vector<32x256xf32>
    %c255_i32 = arith.constant 255 : i32
    %22 = tpu.dynamic_rotate %1 by %c255_i32 dim 1 : vector<32x256xf32>, i32 -> vector<32x256xf32>
    %c4_14 = arith.constant 4 : index
    %c0_15 = arith.constant 0 : index
    %23 = vector.load %arg4[%c4_14, %c0_15] : memref<8x256xf32, #tpu.memory_space<vmem>>, vector<1x256xf32>
    %24 = vector.broadcast %23 : vector<1x256xf32> to vector<32x256xf32>
    %25 = arith.mulf %22, %24 : vector<32x256xf32>
    %c241_i32 = arith.constant 241 : i32
    %26 = tpu.dynamic_rotate %1 by %c241_i32 dim 1 : vector<32x256xf32>, i32 -> vector<32x256xf32>
    %c5 = arith.constant 5 : index
    %c0_16 = arith.constant 0 : index
    %27 = vector.load %arg4[%c5, %c0_16] : memref<8x256xf32, #tpu.memory_space<vmem>>, vector<1x256xf32>
    %28 = vector.broadcast %27 : vector<1x256xf32> to vector<32x256xf32>
    %29 = arith.mulf %26, %28 : vector<32x256xf32>
    %c240_i32 = arith.constant 240 : i32
    %30 = tpu.dynamic_rotate %1 by %c240_i32 dim 1 : vector<32x256xf32>, i32 -> vector<32x256xf32>
    %c6 = arith.constant 6 : index
    %c0_17 = arith.constant 0 : index
    %31 = vector.load %arg4[%c6, %c0_17] : memref<8x256xf32, #tpu.memory_space<vmem>>, vector<1x256xf32>
    %32 = vector.broadcast %31 : vector<1x256xf32> to vector<32x256xf32>
    %33 = arith.mulf %30, %32 : vector<32x256xf32>
    %c239_i32 = arith.constant 239 : i32
    %34 = tpu.dynamic_rotate %1 by %c239_i32 dim 1 : vector<32x256xf32>, i32 -> vector<32x256xf32>
    %c7 = arith.constant 7 : index
    %c0_18 = arith.constant 0 : index
    %35 = vector.load %arg4[%c7, %c0_18] : memref<8x256xf32, #tpu.memory_space<vmem>>, vector<1x256xf32>
    %36 = vector.broadcast %35 : vector<1x256xf32> to vector<32x256xf32>
    %37 = arith.mulf %34, %36 : vector<32x256xf32>
    %38 = tpu.concatenate %9, %13, %17, %21, %1, %25, %29, %33, %37 in 0 : vector<32x256xf32>, vector<32x256xf32>, vector<32x256xf32>, vector<32x256xf32>, vector<32x256xf32>, vector<32x256xf32>, vector<32x256xf32>, vector<32x256xf32>, vector<32x256xf32> -> vector<288x256xf32>
    %39 = arith.truncf %38 : vector<288x256xf32> to vector<288x256xbf16>
    %c0_19 = arith.constant 0 : index
    %c0_20 = arith.constant 0 : index
    %40 = vector.load %arg2[%c0_19, %c0_20] : memref<32x288xbf16, #tpu.memory_space<vmem>>, vector<32x288xbf16>
    %cst = arith.constant dense<0.000000e+00> : vector<32x256xf32>
    %41 = tpu.matmul %40, %39, %cst {dimension_numbers = #tpu.dot_dimension_numbers<[1], [0], [0], [1], [0, 0, 1, 1], [], []>} : vector<32x288xbf16>, vector<288x256xbf16>, vector<32x256xf32> -> vector<32x256xf32>
    %42 = vector.broadcast %2 : vector<32x1xf32> to vector<32x256xf32>
    %43 = arith.addf %41, %42 : vector<32x256xf32>
    %cst_21 = arith.constant 0.000000e+00 : f32
    %44 = vector.broadcast %cst_21 : f32 to vector<32x256xf32>
    %45 = arith.maximumf %43, %44 : vector<32x256xf32>
    %c17_i32_22 = arith.constant 17 : i32
    %46 = tpu.dynamic_rotate %45 by %c17_i32_22 dim 1 : vector<32x256xf32>, i32 -> vector<32x256xf32>
    %c0_23 = arith.constant 0 : index
    %c0_24 = arith.constant 0 : index
    %47 = vector.load %arg4[%c0_23, %c0_24] : memref<8x256xf32, #tpu.memory_space<vmem>>, vector<1x256xf32>
    %48 = vector.broadcast %47 : vector<1x256xf32> to vector<32x256xf32>
    %49 = arith.mulf %46, %48 : vector<32x256xf32>
    %c16_i32_25 = arith.constant 16 : i32
    %50 = tpu.dynamic_rotate %45 by %c16_i32_25 dim 1 : vector<32x256xf32>, i32 -> vector<32x256xf32>
    %c1_26 = arith.constant 1 : index
    %c0_27 = arith.constant 0 : index
    %51 = vector.load %arg4[%c1_26, %c0_27] : memref<8x256xf32, #tpu.memory_space<vmem>>, vector<1x256xf32>
    %52 = vector.broadcast %51 : vector<1x256xf32> to vector<32x256xf32>
    %53 = arith.mulf %50, %52 : vector<32x256xf32>
    %c15_i32_28 = arith.constant 15 : i32
    %54 = tpu.dynamic_rotate %45 by %c15_i32_28 dim 1 : vector<32x256xf32>, i32 -> vector<32x256xf32>
    %c2_29 = arith.constant 2 : index
    %c0_30 = arith.constant 0 : index
    %55 = vector.load %arg4[%c2_29, %c0_30] : memref<8x256xf32, #tpu.memory_space<vmem>>, vector<1x256xf32>
    %56 = vector.broadcast %55 : vector<1x256xf32> to vector<32x256xf32>
    %57 = arith.mulf %54, %56 : vector<32x256xf32>
    %c1_i32_31 = arith.constant 1 : i32
    %58 = tpu.dynamic_rotate %45 by %c1_i32_31 dim 1 : vector<32x256xf32>, i32 -> vector<32x256xf32>
    %c3_32 = arith.constant 3 : index
    %c0_33 = arith.constant 0 : index
    %59 = vector.load %arg4[%c3_32, %c0_33] : memref<8x256xf32, #tpu.memory_space<vmem>>, vector<1x256xf32>
    %60 = vector.broadcast %59 : vector<1x256xf32> to vector<32x256xf32>
    %61 = arith.mulf %58, %60 : vector<32x256xf32>
    %c255_i32_34 = arith.constant 255 : i32
    %62 = tpu.dynamic_rotate %45 by %c255_i32_34 dim 1 : vector<32x256xf32>, i32 -> vector<32x256xf32>
    %c4_35 = arith.constant 4 : index
    %c0_36 = arith.constant 0 : index
    %63 = vector.load %arg4[%c4_35, %c0_36] : memref<8x256xf32, #tpu.memory_space<vmem>>, vector<1x256xf32>
    %64 = vector.broadcast %63 : vector<1x256xf32> to vector<32x256xf32>
    %65 = arith.mulf %62, %64 : vector<32x256xf32>
    %c241_i32_37 = arith.constant 241 : i32
    %66 = tpu.dynamic_rotate %45 by %c241_i32_37 dim 1 : vector<32x256xf32>, i32 -> vector<32x256xf32>
    %c5_38 = arith.constant 5 : index
    %c0_39 = arith.constant 0 : index
    %67 = vector.load %arg4[%c5_38, %c0_39] : memref<8x256xf32, #tpu.memory_space<vmem>>, vector<1x256xf32>
    %68 = vector.broadcast %67 : vector<1x256xf32> to vector<32x256xf32>
    %69 = arith.mulf %66, %68 : vector<32x256xf32>
    %c240_i32_40 = arith.constant 240 : i32
    %70 = tpu.dynamic_rotate %45 by %c240_i32_40 dim 1 : vector<32x256xf32>, i32 -> vector<32x256xf32>
    %c6_41 = arith.constant 6 : index
    %c0_42 = arith.constant 0 : index
    %71 = vector.load %arg4[%c6_41, %c0_42] : memref<8x256xf32, #tpu.memory_space<vmem>>, vector<1x256xf32>
    %72 = vector.broadcast %71 : vector<1x256xf32> to vector<32x256xf32>
    %73 = arith.mulf %70, %72 : vector<32x256xf32>
    %c239_i32_43 = arith.constant 239 : i32
    %74 = tpu.dynamic_rotate %45 by %c239_i32_43 dim 1 : vector<32x256xf32>, i32 -> vector<32x256xf32>
    %c7_44 = arith.constant 7 : index
    %c0_45 = arith.constant 0 : index
    %75 = vector.load %arg4[%c7_44, %c0_45] : memref<8x256xf32, #tpu.memory_space<vmem>>, vector<1x256xf32>
    %76 = vector.broadcast %75 : vector<1x256xf32> to vector<32x256xf32>
    %77 = arith.mulf %74, %76 : vector<32x256xf32>
    %78 = tpu.concatenate %49, %53, %57, %61, %45, %65, %69, %73, %77 in 0 : vector<32x256xf32>, vector<32x256xf32>, vector<32x256xf32>, vector<32x256xf32>, vector<32x256xf32>, vector<32x256xf32>, vector<32x256xf32>, vector<32x256xf32>, vector<32x256xf32> -> vector<288x256xf32>
    %79 = arith.truncf %78 : vector<288x256xf32> to vector<288x256xbf16>
    %c0_46 = arith.constant 0 : index
    %c0_47 = arith.constant 0 : index
    %80 = vector.load %arg3[%c0_46, %c0_47] : memref<32x288xbf16, #tpu.memory_space<vmem>>, vector<32x288xbf16>
    %cst_48 = arith.constant dense<0.000000e+00> : vector<32x256xf32>
    %81 = tpu.matmul %80, %79, %cst_48 {dimension_numbers = #tpu.dot_dimension_numbers<[1], [0], [0], [1], [0, 0, 1, 1], [], []>} : vector<32x288xbf16>, vector<288x256xbf16>, vector<32x256xf32> -> vector<32x256xf32>
    %82 = vector.broadcast %3 : vector<32x1xf32> to vector<32x256xf32>
    %83 = arith.addf %81, %82 : vector<32x256xf32>
    %cst_49 = arith.constant dense<0.000000e+00> : vector<32xf32>
    %84 = vector.multi_reduction <add>, %83, %cst_49 [1] : vector<32x256xf32> to vector<32xf32>
    %85 = vector.shape_cast %84 : vector<32xf32> to vector<32x1xf32>
    %cst_50 = arith.constant 2.560000e+02 : f32
    %86 = vector.broadcast %cst_50 : f32 to vector<32x1xf32>
    %87 = arith.divf %85, %86 : vector<32x1xf32>
    %88 = vector.broadcast %87 : vector<32x1xf32> to vector<32x2xf32>
    %89 = arith.mulf %4, %88 : vector<32x2xf32>
    %cst_51 = arith.constant dense<0.000000e+00> : vector<2xf32>
    %90 = vector.multi_reduction <add>, %89, %cst_51 [0] : vector<32x2xf32> to vector<2xf32>
    %91 = vector.shape_cast %90 : vector<2xf32> to vector<1x2xf32>
    %cst_52 = arith.constant 0.000000e+00 : f32
    %92 = vector.broadcast %cst_52 : f32 to vector<1x2xf32>
    %93 = arith.maximumf %91, %92 : vector<1x2xf32>
    %94 = vector.broadcast %93 : vector<1x2xf32> to vector<32x2xf32>
    %95 = arith.mulf %5, %94 : vector<32x2xf32>
    %cst_53 = arith.constant dense<0.000000e+00> : vector<32xf32>
    %96 = vector.multi_reduction <add>, %95, %cst_53 [1] : vector<32x2xf32> to vector<32xf32>
    %97 = vector.shape_cast %96 : vector<32xf32> to vector<32x1xf32>
    %98 = arith.negf %97 : vector<32x1xf32>
    %99 = math.exp %98 : vector<32x1xf32>
    %cst_54 = arith.constant 1.000000e+00 : f32
    %100 = vector.broadcast %cst_54 : f32 to vector<32x1xf32>
    %101 = arith.addf %100, %99 : vector<32x1xf32>
    %102 = arith.divf %100, %101 : vector<32x1xf32>
    %103 = vector.broadcast %102 : vector<32x1xf32> to vector<32x256xf32>
    %104 = arith.mulf %83, %103 : vector<32x256xf32>
    %105 = arith.addf %104, %1 : vector<32x256xf32>
    %cst_55 = arith.constant 0.000000e+00 : f32
    %106 = vector.broadcast %cst_55 : f32 to vector<32x256xf32>
    %107 = arith.maximumf %105, %106 : vector<32x256xf32>
    %c0_56 = arith.constant 0 : index
    %c0_57 = arith.constant 0 : index
    %c0_58 = arith.constant 0 : index
    %108 = vector.load %arg6[%c0_56, %c0_57, %c0_58] : memref<1x32x256xf32, #tpu.memory_space<vmem>>, vector<1x32x256xf32>
    %109 = vector.shape_cast %108 : vector<1x32x256xf32> to vector<32x256xf32>
    %110 = vector.shape_cast %107 : vector<32x256xf32> to vector<1x32x256xf32>
    tpu.vector_store %arg6[%c0_56, %c0_57, %c0_58], %110 {strides = array<i32>} : memref<1x32x256xf32, #tpu.memory_space<vmem>>, vector<1x32x256xf32>,
    return
  }
  func.func @transform_0(%arg0: i32) -> (i32, i32, i32) {
    %c0_i32 = arith.constant 0 : i32
    %c0_i32_0 = arith.constant 0 : i32
    %c0_i32_1 = arith.constant 0 : i32
    return %arg0, %c0_i32, %c0_i32_0 : i32, i32, i32
  }
  func.func @transform_1(%arg0: i32) -> (i32, i32) {
    %c0_i32 = arith.constant 0 : i32
    %c0_i32_0 = arith.constant 0 : i32
    %c0_i32_1 = arith.constant 0 : i32
    return %c0_i32, %c0_i32_0 : i32, i32
  }
  func.func @transform_2(%arg0: i32) -> (i32, i32) {
    %c0_i32 = arith.constant 0 : i32
    %c0_i32_0 = arith.constant 0 : i32
    %c0_i32_1 = arith.constant 0 : i32
    return %c0_i32, %c0_i32_0 : i32, i32
  }
  func.func @transform_3(%arg0: i32) -> (i32, i32) {
    %c0_i32 = arith.constant 0 : i32
    %c0_i32_0 = arith.constant 0 : i32
    %c0_i32_1 = arith.constant 0 : i32
    return %c0_i32, %c0_i32_0 : i32, i32
  }
  func.func @transform_4(%arg0: i32) -> (i32, i32) {
    %c0_i32 = arith.constant 0 : i32
    %c0_i32_0 = arith.constant 0 : i32
    %c0_i32_1 = arith.constant 0 : i32
    return %c0_i32, %c0_i32_0 : i32, i32
  }
  func.func @transform_5(%arg0: i32) -> (i32, i32, i32) {
    %c0_i32 = arith.constant 0 : i32
    %c0_i32_0 = arith.constant 0 : i32
    %c0_i32_1 = arith.constant 0 : i32
    return %arg0, %c0_i32, %c0_i32_0 : i32, i32, i32
  }
}

</mosaic_0001>

<bundles_post_ra>
// kernel: tpu_custom_call.1
= control target key start
LH: loop header
LB: loop body
LE: loop exit
PB: predicated region body
PF: predicated region fallthrough
CT: control target
= control target key end

     0   :  { %10 = vsyncpa [#allocation3], 0  ;;  %s3161_s0 = inlined_call_operand.hbm [shape: f32[2,32,256], index: 0, kind: input, shape index: {}]   ;;  %s3162_s1 = inlined_call_operand.hbm [shape: bf16[32,288], index: 1, kind: input, shape index: {}]   ;;  %s3163_s2 = inlined_call_operand.hbm [shape: bf16[32,288], index: 2, kind: input, shape index: {}]   ;;  %s3164_s3 = inlined_call_operand.vmem [shape: f32[8,256], index: 3, kind: input, shape index: {}]   ;;  %s3165_s4 = inlined_call_operand.vmem [shape: f32[32,6], index: 4, kind: input, shape index: {}]   ;;  %s3166_s5 = inlined_call_operand.hbm [shape: f32[2,32,256], index: 5, kind: output, shape index: {}]  }
   0x1   :  { %12 = vsyncpa [#allocation3 + $0x1], 0 }
   0x2   :  { %13 = vsyncpa [#allocation6], 0 }
   0x3   :  { %14 = vsyncpa [#allocation4], 0 }
   0x4   :  { %16 = vsyncpa [#allocation4 + $0x1], 0  ;;  %s1982_s18 = smov 0   ;;  %s1984_s19 = smov 0  }
   0x5   :  { %s1986_s20 = smov 0   ;;  %s1988_s21 = smov 0  }
   0x6 LB: > { %s2003_s22 = sadd.s32 4294967295, %s1929_s21   ;;  %s1562_s23 = sadd.s32 4294967294, %s1929_s21   ;;  %s1929_s21 = sphi %s1988_s21, %s3188_s21   ;;  %s1925_s20 = sphi %s1986_s20, %s3187_s20   ;;  %s1921_s19 = sphi %s1984_s19, %s3186_s19   ;;  %s1917_s18 = sphi %s1982_s18, %s3185_s18  }
   0x7   : > { %p42_p0 = scmp.ne.s32.totalorder %s1921_s19, %s1917_s18  ;;  %p3167_p1 = scmp.eq.s32.totalorder %s2003_s22, 0 }
   0x8   : > { %p156_p3 = scmp.eq.s32.totalorder %s1562_s23, 1  ;;  %p1563_p5 = scmp.ge.s32.totalorder %s1929_s21, 1 }
   0x9   : > { %p2012_p4 = por %p3167_p1, %p42_p0  ;;  %p163_p7 = scmp.lt.s32.totalorder %s1929_s21, 3 }
   0xa   : > { %p2017_p6 = por %p156_p3, %p42_p0  ;;  %s1931_s27 = smov [#allocation5]  }
   0xb   : > { %s3171_s24 = scalar_select %p2012_p4, 1, 0 }
   0xc   : > { %s3172_s25 = scalar_select %p2017_p6, 1, 0 }
   0xd   : > { %p2022_p8 = pnand %p1563_p5, %p163_p7  ;;  %s175_s28 = sshll.u32 %s1931_s27, 4  ;;  %s2026_s28 = int_to_ptr.vmem [resolvable:$true] %s175_s28 }
   0xe   : > { %s1932_s30 = smov [#allocation7]   ;;  %s1773_s9 = scalar_lea.hbm %s3162_s1, 768 }
   0xf   : > { %p1653_p9 = pneg %p2022_p8  ;;  %s188_s6 = sshll.u32 %s1932_s30, 4  ;;  %s2037_s6 = int_to_ptr.vmem [resolvable:$true] %s188_s6 }
  0x10   : > { %p1774_p12 = scmp.ne.s32.totalorder %s3162_s1, %s1773_s9  ;;  %p1780_p5 = scmp.lt.u32.totalorder %s1773_s9, %s3162_s1 }
  0x11   : > { %p2033_p11 = pnand %p1653_p9, %p3167_p1 }
  0x13   : > { %p1775_p13 = pneg %p2033_p11 }
  0x15   : > { %p1776_p0 = pnand %p1775_p13, %p1774_p12 }
  0x17   : > { %p1777_p3 = pneg %p1776_p0 }
  0x19   : > { %p1782_p7 = pnand %p1780_p5, %p1777_p3 }
  0x1b   : > { %1785 = shalt.err (!%p1782_p7)
}
  0x1c   : > { %s1786_s14 = scalar_lea.vmem %s2026_s28, 768  ;;  %p1794_p2 = scmp.lt.s32.totalorder %s2026_s28, %s2026_s28 }
  0x1d   : > { %p1787_p9 = scmp.ne.s32.totalorder %s2026_s28, %s1786_s14  ;;  %p1795_p12 = scmp.lt.s32.totalorder %s1786_s14, %s1786_s14 }
  0x1f   : > { %p1789_p10 = pnand %p1787_p9, %p1775_p13  ;;  %p1796_p0 = por %p1795_p12, %p1794_p2 }
  0x21   : > { %p1790_p1 = pneg %p1789_p10 }
  0x23   : > { %p1797_p6 = pnand %p1796_p0, %p1790_p1 }
  0x25   : > { %1800 = shalt.err (!%p1797_p6)
}
  0x26   : > { %s1933_s15 = smov 192   ;;  %s1934_s16 = smov 12  }
  0x27   : > { %1656 = dma.hbm_to_vmem [thread:$0]  (!%p2033_p11), %s3162_s1, 768, %s2026_s28, [#allocation6], %s1933_s15, %s1933_s15, %s1934_s16  }
  0x28   : > { %s1801_s7 = scalar_lea.hbm %s3163_s2, 768 }
  0x29   : > { %p1802_p2 = scmp.ne.s32.totalorder %s3163_s2, %s1801_s7  ;;  %p1808_p10 = scmp.lt.u32.totalorder %s1801_s7, %s3163_s2 }
  0x2b   : > { %p1804_p1 = pnand %p1802_p2, %p1775_p13 }
  0x2d   : > { %p1805_p6 = pneg %p1804_p1 }
  0x2f   : > { %p1810_p3 = pnand %p1808_p10, %p1805_p6 }
  0x31   : > { %1813 = shalt.err (!%p1810_p3)
}
  0x32   : > { %s1814_s28 = scalar_lea.vmem %s2037_s6, 768  ;;  %p1822_p12 = scmp.lt.s32.totalorder %s2037_s6, %s2037_s6 }
  0x33   : > { %p1815_p5 = scmp.ne.s32.totalorder %s2037_s6, %s1814_s28  ;;  %p1823_p0 = scmp.lt.s32.totalorder %s1814_s28, %s1814_s28 }
  0x35   : > { %p1817_p7 = pnand %p1815_p5, %p1775_p13  ;;  %p1824_p2 = por %p1823_p0, %p1822_p12 }
  0x37   : > { %p1818_p9 = pneg %p1817_p7 }
  0x39   : > { %p1825_p1 = pnand %p1824_p2, %p1818_p9 }
  0x3b   : > { %1828 = shalt.err (!%p1825_p1)
}
  0x3c   : > { %1659 = dma.hbm_to_vmem [thread:$0]  (!%p2033_p11), %s3163_s2, 768, %s2037_s6, [#allocation6], %s1933_s15, %s1933_s15, %s1934_s16  }
  0x3d   : > { %s2092_s14 = sadd.s32 1, %s1929_s21   ;;  %s29_s29 = sadd.s32 1, %s1925_s20 }
  0x3e   : > { %s26_s17 = ssub.s32 %s1929_s21, %s2092_s14  ;;  %p36_p13 = scmp.ne.s32.totalorder %s1925_s20, %s1921_s19 }
  0x3f   : > { %p27_p6 = scmp.eq.s32.totalorder %s26_s17, 0  ;;  %p37_p10 = scmp.eq.s32.totalorder %s1929_s21, 0 }
  0x40   : > { %p3175_p3 = scmp.eq.s32.totalorder %s2003_s22, 1  ;;  %p1670_p7 = scmp.lt.s32.totalorder %s1929_s21, 2 }
  0x41   : > { %s2108_s27 = scalar_select %p27_p6, %s1925_s20, %s29_s29  }
  0x42   : > { %p2102_p5 = por %p3175_p3, %p36_p13  ;;  %p38_p9 = por %p37_p10, %p36_p13 }
  0x43   : > { %s208_s30 = sand.u32 1, %s1925_s20   ;;  %s1607_s6 = sshll.u32 %s1929_s21, 10 }
  0x44   : > { %s3176_s23 = scalar_select %p2102_p5, 1, 0 }
  0x45   : > { %s1567_s7 = sshll.u32 %s208_s30, 6  ;;  %s2115_s8 = scalar_lea.hbm %s3161_s0, %s1607_s6 }
  0x46   : > { %s212_s9 = scalar_lea.vmem [#allocation2], %s1567_s7  ;;  %p2119_p11 = pnand %p1670_p7, %p38_p9 }
  0x47   : > { %s219_s10 = sshll.u32 %s212_s9, 4  ;;  %s2123_s28 = scalar_lea.sflag [#allocation3], %s208_s30  ;;  %s2117_s10 = int_to_ptr.vmem [resolvable:$true] %s219_s10 }
  0x48   : > { %s1829_s12 = scalar_lea.hbm %s2115_s8, 1024  ;;  %p1831_p0 = pneg %p2119_p11 }
  0x49   : > { %p1830_p12 = scmp.ne.s32.totalorder %s2115_s8, %s1829_s12  ;;  %s1834_s17 = scalar_lea.hbm %s3161_s0, 2048 }
  0x4a   : > { %p1835_p13 = scmp.lt.u32.totalorder %s2115_s8, %s3161_s0  ;;  %p1836_p6 = scmp.lt.u32.totalorder %s1834_s17, %s1829_s12 }
  0x4b   : > { %p1832_p2 = pnand %p1831_p0, %p1830_p12  ;;  %p1838_p3 = scmp.lt.u32.totalorder %s1829_s12, %s2115_s8 }
  0x4c   : > { %p1837_p10 = por %p1836_p6, %p1835_p13 }
  0x4d   : > { %p1833_p1 = pneg %p1832_p2 }
  0x4e   : > { %p1839_p7 = por %p1838_p3, %p1837_p10 }
  0x50   : > { %p1840_p9 = pnand %p1839_p7, %p1833_p1 }
  0x52   : > { %1843 = shalt.err (!%p1840_p9)
}
  0x53   : > { %s1844_s30 = scalar_lea.vmem %s2117_s10, 1024  ;;  %s1935_s15 = smov [#allocation2]  }
  0x54   : > { %p1845_p12 = scmp.ne.s32.totalorder %s2117_s10, %s1844_s30  ;;  %s1849_s16 = sshll.u32 %s1935_s15, 4  ;;  %s1850_s16 = int_to_ptr.vmem [resolvable:$false] %s1849_s16 }
  0x55   : > { %s1851_s9 = scalar_lea.vmem %s1850_s16, 2048  ;;  %p1852_p4 = scmp.lt.s32.totalorder %s2117_s10, %s1850_s16 }
  0x56   : > { %p1847_p2 = pnand %p1845_p12, %p1831_p0  ;;  %p1853_p13 = scmp.lt.s32.totalorder %s1851_s9, %s1844_s30 }
  0x58   : > { %p1848_p5 = pneg %p1847_p2  ;;  %p1854_p6 = por %p1853_p13, %p1852_p4 }
  0x5a   : > { %p1855_p10 = pnand %p1854_p6, %p1848_p5 }
  0x5c   : > { %1858 = shalt.err (!%p1855_p10)
}
  0x5d   : > { %s1936_s12 = smov 256   ;;  %s1937_s13 = smov 16  }
  0x5e   : > { %1663 = dma.hbm_to_vmem [thread:$0]  (!%p2119_p11), %s2115_s8, 1024, %s2117_s10, %s2123_s28, %s1936_s12, %s1936_s12, %s1937_s13  }
  0x5f   : > { %231 = sbr.rel (%p2022_p8) target bundleno = 1640 (0x668), region = 40  ;;  %s2154_s29 = sand.u32 (!%p2022_p8), 1, %s1921_s19  }
  0x60   : > { %s3170_s17 = sshll.u32 (!%p2022_p8), %s2154_s29, 6  ;;  %s234_s7 = scalar_lea.sflag (!%p2022_p8), [#allocation3], %s2154_s29 }
  0x61   : > { %s2160_s6 = scalar_lea.vmem (!%p2022_p8), [#allocation2], %s3170_s17  ;;  %p3178_p4 = scmp.ne.s32.totalorder (!%p2022_p8), %s3171_s24, 0 }
  0x66   : > { %1904 = dma.done.wait (%p3178_p4), %s234_s7, 1024  }
  0x67   : > { %1906 = vsyncadd (%p3178_p4), %s234_s7, 4294966272  ;;  %p3179_p5 = scmp.eq.s32.totalorder %s2003_s22, 0 }
  0x69   : > { %1908 = dma.done.wait (%p3179_p5), [#allocation6], 1536   ;;  %p3180_p8 = pmov %p3179_p5 }
  0x6a   : > { %v2171_v0 = vld [vmem:[%s2160_s6 + $0x8] sm:$0xff]  ;;  %v2174_v1 = vld [vmem:[%s2160_s6] sm:$0xff]  ;;  %s1938_s24 = smov 17   ;;  %v2181_v2 = vld [vmem:[%s2160_s6 + $0x18] sm:$0xff]  ;;  %s1939_s26 = smov 16   ;;  %v301_v9 = vlaneseq  ;;  %v1946_v23 = vmov 0  }
  0x6b   : > { %1910 = vsyncadd (%p3180_p8), [#allocation6], 4294965760  ;;  %293 = vrot.lane.b32.xlu1 %v2171_v0, %s1938_s24  ;;  %285 = vrot.lane.b32.xlu0 %v2174_v1, %s1938_s24  ;;  %v2184_v3 = vld [vmem:[%s2160_s6 + $0x10] sm:$0xff]  ;;  %v2194_v5 = vld [vmem:[%s2160_s6 + $0x20] sm:$0xff]  ;;  %s1940_s8 = smov 15   ;;  %s1941_s10 = smov 1  }
  0x6c   : > { %v2187_v4 = vld [vmem:[%s2160_s6 + $0x30] sm:$0xff]  ;;  %v2201_v6 = vld [vmem:[%s2160_s6 + $0x38] sm:$0xff]  ;;  %v2204_v7 = vld [vmem:[%s2160_s6 + $0x28] sm:$0xff]  ;;  %s1942_s11 = smov 127   ;;  %s1943_s28 = smov 113   ;;  %v315_v10 = vshrl.u32 %v301_v9, 7  ;;  %1726 = vset.pattern.permute.xlu1 %v1946_v23  ;;  %1725 = vset.pattern.permute.xlu0 %v1946_v23 }
  0x6d   : > { %s1944_s30 = smov 112   ;;  %v1731_v8 = vld [vmem:[#allocation5 + $0x4] ss:$12 sps:$4 sm:$0xff]   ;;  %v2306_v11 = vand.u32 127, %v301_v9  ;;  %s1945_s15 = smov 111   ;;  %v2367_v44 = vld [vmem:[%s3165_s4 + $0x8] sm:$0xff] }
  0x6e   : > { %787 = vmatprep.mubr.bf16.mxu0 %v1731_v8  ;;  %v2308_v12 = vsub.s32 1, %v315_v10  ;;  %v312_v13 = vld [vmem:[%s3164_s3] ss:$8 sm:$0x3]  ;;  %v2317_v14 = vsub.s32 0, %v315_v10  ;;  %v2382_v51 = vld [vmem:[%s3165_s4 + $0x10] sm:$0xff] }
  0x6f   : > { %295 = vrot.lane.b32.xlu1 %v2181_v2, %s1938_s24  ;;  %287 = vrot.lane.b32.xlu0 %v2184_v3, %s1938_s24  ;;  %vm303_vm0 = vcmp.lt.s32.totalorder %v2306_v11, 17  ;;  %v2372_v45 = vld [vmem:[%s3165_s4] sm:$0xff]  ;;  %v2387_v52 = vld [vmem:[%s3165_s4 + $0x18] sm:$0xff]  ;;  %vm348_vm1 = vcmp.lt.s32.totalorder %v2306_v11, 16  ;;  %vm394_vm2 = vcmp.lt.s32.totalorder %v2306_v11, 15  ;;  %vm440_vm3 = vcmp.lt.s32.totalorder %v2306_v11, 1 }
  0x70   : > { %v2321_v17 = vrot.slane %v312_v13, %v2308_v12  ;;  %v2330_v19 = vrot.slane %v312_v13, %v2317_v14  ;;  %v1575_v46 = vld [vmem:[%s3164_s3 + $0x1] ss:$8 sm:$0x3]  ;;  %vm486_vm4 = vcmp.lt.s32.totalorder %v2306_v11, 127  ;;  %vm532_vm5 = vcmp.lt.s32.totalorder %v2306_v11, 113  ;;  %s1948_s9 = smov 2  }
  0x71   : > { %v2391_v53 = vrot.slane %v1575_v46, %v2317_v14  ;;  %v2394_v54 = vrot.slane %v1575_v46, %v2308_v12  ;;  %vm578_vm6 = vcmp.lt.s32.totalorder %v2306_v11, 112  ;;  %vm624_vm7 = vcmp.lt.s32.totalorder %v2306_v11, 111  ;;  %v1744_v11 = vld [vmem:[#allocation7 + $0x20] ss:$12 sps:$4 sm:$0xff]   ;;  %s1949_s12 = smov 124   ;;  %s1608_s13 = sshll.u32 %s2003_s22, 10 }
  0x72   : > { %vm748_vm8 = vcmask 261120   ;;  %vm1348_vm9 = vcmask 31760   ;;  %vm1387_vm10 = vcmask 15360   ;;  %s3181_s7 = sshll.u32 %s2154_s29, 6  ;;  %p3182_p0 = scmp.ne.s32.totalorder %s3176_s23, 0 }
  0x73   : > { %291 = vrot.lane.b32.xlu1 %v2187_v4, %s1938_s24  ;;  %289 = vrot.lane.b32.xlu0 %v2194_v5, %s1938_s24  ;;  %s271_s16 = scalar_lea.vmem [#allocation8], %s3181_s7 }
  0x77   : > { %299 = vrot.lane.b32.xlu1 %v2201_v6, %s1938_s24  ;;  %297 = vrot.lane.b32.xlu0 %v2204_v7, %s1938_s24 }
  0x7b   : > { %334 = vrot.lane.b32.xlu1 %v2184_v3, %s1939_s26  ;;  %332 = vrot.lane.b32.xlu0 %v2174_v1, %s1939_s26 }
  0x7f   : > { %342 = vrot.lane.b32.xlu1 %v2181_v2, %s1939_s26  ;;  %340 = vrot.lane.b32.xlu0 %v2171_v0, %s1939_s26 }
  0x83   : > { %338 = vrot.lane.b32.xlu1 %v2187_v4, %s1939_s26  ;;  %336 = vrot.lane.b32.xlu0 %v2194_v5, %s1939_s26 }
  0x87   : > { %346 = vrot.lane.b32.xlu1 %v2201_v6, %s1939_s26  ;;  %344 = vrot.lane.b32.xlu0 %v2204_v7, %s1939_s26 }
  0x8b   : > { %380 = vrot.lane.b32.xlu1 %v2184_v3, %s1940_s8  ;;  %378 = vrot.lane.b32.xlu0 %v2174_v1, %s1940_s8 }
  0x8f   : > { %388 = vrot.lane.b32.xlu1 %v2181_v2, %s1940_s8  ;;  %386 = vrot.lane.b32.xlu0 %v2171_v0, %s1940_s8 }
  0x93   : > { %384 = vrot.lane.b32.xlu1 %v2187_v4, %s1940_s8  ;;  %382 = vrot.lane.b32.xlu0 %v2194_v5, %s1940_s8 }
  0x97   : > { %392 = vrot.lane.b32.xlu1 %v2201_v6, %s1940_s8  ;;  %390 = vrot.lane.b32.xlu0 %v2204_v7, %s1940_s8 }
  0x9b   : > { %426 = vrot.lane.b32.xlu1 %v2184_v3, %s1941_s10  ;;  %424 = vrot.lane.b32.xlu0 %v2174_v1, %s1941_s10 }
  0x9f   : > { %434 = vrot.lane.b32.xlu1 %v2181_v2, %s1941_s10  ;;  %432 = vrot.lane.b32.xlu0 %v2171_v0, %s1941_s10 }
  0xa3   : > { %430 = vrot.lane.b32.xlu1 %v2187_v4, %s1941_s10  ;;  %428 = vrot.lane.b32.xlu0 %v2194_v5, %s1941_s10 }
  0xa7   : > { %438 = vrot.lane.b32.xlu1 %v2201_v6, %s1941_s10  ;;  %436 = vrot.lane.b32.xlu0 %v2204_v7, %s1941_s10 }
  0xab   : > { %472 = vrot.lane.b32.xlu1 %v2184_v3, %s1942_s11  ;;  %470 = vrot.lane.b32.xlu0 %v2174_v1, %s1942_s11 }
  0xaf   : > { %480 = vrot.lane.b32.xlu1 %v2181_v2, %s1942_s11  ;;  %478 = vrot.lane.b32.xlu0 %v2171_v0, %s1942_s11 }
  0xb3   : > { %476 = vrot.lane.b32.xlu1 %v2187_v4, %s1942_s11  ;;  %474 = vrot.lane.b32.xlu0 %v2194_v5, %s1942_s11 }
  0xb7   : > { %484 = vrot.lane.b32.xlu1 %v2201_v6, %s1942_s11  ;;  %482 = vrot.lane.b32.xlu0 %v2204_v7, %s1942_s11 }
  0xbb   : > { %518 = vrot.lane.b32.xlu1 %v2184_v3, %s1943_s28  ;;  %516 = vrot.lane.b32.xlu0 %v2174_v1, %s1943_s28 }
  0xbf   : > { %526 = vrot.lane.b32.xlu1 %v2181_v2, %s1943_s28  ;;  %524 = vrot.lane.b32.xlu0 %v2171_v0, %s1943_s28 }
  0xc3   : > { %522 = vrot.lane.b32.xlu1 %v2187_v4, %s1943_s28  ;;  %520 = vrot.lane.b32.xlu0 %v2194_v5, %s1943_s28 }
  0xc7   : > { %530 = vrot.lane.b32.xlu1 %v2201_v6, %s1943_s28  ;;  %528 = vrot.lane.b32.xlu0 %v2204_v7, %s1943_s28 }
  0xcb   : > { %564 = vrot.lane.b32.xlu1 %v2184_v3, %s1944_s30  ;;  %562 = vrot.lane.b32.xlu0 %v2174_v1, %s1944_s30 }
  0xcf   : > { %572 = vrot.lane.b32.xlu1 %v2181_v2, %s1944_s30  ;;  %570 = vrot.lane.b32.xlu0 %v2171_v0, %s1944_s30 }
  0xd3   : > { %568 = vrot.lane.b32.xlu1 %v2187_v4, %s1944_s30  ;;  %566 = vrot.lane.b32.xlu0 %v2194_v5, %s1944_s30 }
  0xd7   : > { %576 = vrot.lane.b32.xlu1 %v2201_v6, %s1944_s30  ;;  %574 = vrot.lane.b32.xlu0 %v2204_v7, %s1944_s30 }
  0xdb   : > { %610 = vrot.lane.b32.xlu1 %v2184_v3, %s1945_s15  ;;  %608 = vrot.lane.b32.xlu0 %v2174_v1, %s1945_s15 }
  0xdd   : > { %v294_v15 = vpop.permute.xlu1 %293  ;;  %v286_v16 = vpop.permute.xlu0 %285 }
  0xde   : > { %v304_v18 = vsel %vm303_vm0, %v286_v16, %v294_v15  ;;  %v308_v20 = vsel %vm303_vm0, %v294_v15, %v286_v16 }
  0xdf   : > { %618 = vrot.lane.b32.xlu1 %v2181_v2, %s1945_s15  ;;  %616 = vrot.lane.b32.xlu0 %v2171_v0, %s1945_s15  ;;  %v325_v26 = vmul.f32 %v2321_v17, %v304_v18  ;;  %v324_v28 = vmul.f32 %v2330_v19, %v308_v20 }
  0xe1   : > { %v296_v21 = vpop.permute.xlu1 %295  ;;  %v288_v22 = vpop.permute.xlu0 %287 }
  0xe2   : > { %v309_v24 = vsel %vm303_vm0, %v296_v21, %v288_v22  ;;  %v305_v25 = vsel %vm303_vm0, %v288_v22, %v296_v21 }
  0xe3   : > { %614 = vrot.lane.b32.xlu1 %v2187_v4, %s1945_s15  ;;  %612 = vrot.lane.b32.xlu0 %v2194_v5, %s1945_s15  ;;  %v327_v27 = vmul.f32 %v2321_v17, %v305_v25  ;;  %v326_v29 = vmul.f32 %v2330_v19, %v309_v24 }
  0xe5   : > { %v292_v30 = vpop.permute.xlu1 %291  ;;  %v290_v31 = vpop.permute.xlu0 %289  ;;  %v655_v32 = vpack.c.bf16 %v327_v27, %v325_v26  ;;  %v654_v33 = vpack.c.bf16 %v326_v29, %v324_v28  ;;  %v1576_v29 = vld [vmem:[%s3164_s3 + $0x2] ss:$8 sm:$0x3] }
  0xe7   : > { %622 = vrot.lane.b32.xlu1 %v2201_v6, %s1945_s15  ;;  %620 = vrot.lane.b32.xlu0 %v2204_v7, %s1945_s15 }
  0xe8   : > { %755 = vmatprep.subr.bf16.mxu0 %v655_v32 }
  0xe9   : > { %756 = vmatpush1.bf16.msra.mxu0 %v654_v33  ;;  %v300_v34 = vpop.permute.xlu1 %299  ;;  %v298_v35 = vpop.permute.xlu0 %297 }
  0xea   : > { %v307_v36 = vsel %vm303_vm0, %v292_v30, %v300_v34  ;;  %v311_v37 = vsel %vm303_vm0, %v300_v34, %v292_v30  ;;  %v306_v38 = vsel %vm303_vm0, %v290_v31, %v298_v35  ;;  %v310_v39 = vsel %vm303_vm0, %v298_v35, %v290_v31 }
  0xeb   : > { %v330_v40 = vmul.f32 %v2330_v19, %v311_v37  ;;  %v331_v41 = vmul.f32 %v2321_v17, %v307_v36  ;;  %v328_v42 = vmul.f32 %v2330_v19, %v310_v39  ;;  %v329_v43 = vmul.f32 %v2321_v17, %v306_v38  ;;  %705 = vperm.xlu1 %1726, %v2367_v44  }
  0xec   : > { %700 = vperm.xlu0 %1725, %v2372_v45   ;;  %v2427_v34 = vrot.slane %v1576_v29, %v2317_v14  ;;  %v2430_v35 = vrot.slane %v1576_v29, %v2308_v12 }
  0xed   : > { %v335_v47 = vpop.permute.xlu1 %334  ;;  %v333_v48 = vpop.permute.xlu0 %332  ;;  %v657_v49 = vpack.c.bf16 %v331_v41, %v329_v43  ;;  %v656_v50 = vpack.c.bf16 %v330_v40, %v328_v42 }
  0xef   : > { %757 = vmatprep.subr.bf16.mxu0 %v657_v49  ;;  %710 = vperm.xlu1 %1726, %v2382_v51  }
  0xf0   : > { %758 = vmatpush1.bf16.msra.mxu0 %v656_v50  ;;  %715 = vperm.xlu0 %1725, %v2387_v52  }
  0xf1   : > { %v343_v55 = vpop.permute.xlu1 %342  ;;  %v341_v56 = vpop.permute.xlu0 %340 }
  0xf2   : > { %v350_v57 = vsel %vm348_vm1, %v335_v47, %v343_v55  ;;  %v354_v58 = vsel %vm348_vm1, %v343_v55, %v335_v47  ;;  %v349_v59 = vsel %vm348_vm1, %v333_v48, %v341_v56  ;;  %v353_v60 = vsel %vm348_vm1, %v341_v56, %v333_v48 }
  0xf3   : > { %v372_v61 = vmul.f32 %v2391_v53, %v354_v58  ;;  %v373_v62 = vmul.f32 %v2394_v54, %v350_v57  ;;  %v370_v63 = vmul.f32 %v2391_v53, %v353_v60  ;;  %v371_v8 = vmul.f32 %v2394_v54, %v349_v59 }
  0xf5   : > { %v339_v9 = vpop.permute.xlu1 %338  ;;  %v337_v10 = vpop.permute.xlu0 %336  ;;  %v659_v13 = vpack.c.bf16 %v373_v62, %v371_v8  ;;  %v658_v15 = vpack.c.bf16 %v372_v61, %v370_v63 }
  0xf7   : > { %759 = vmatprep.subr.bf16.mxu0 %v659_v13 }
  0xf8   : > { %760 = vmatpush1.bf16.msra.mxu0 %v658_v15 }
  0xf9   : > { %v347_v16 = vpop.permute.xlu1 %346  ;;  %v345_v18 = vpop.permute.xlu0 %344 }
  0xfa   : > { %v352_v20 = vsel %vm348_vm1, %v339_v9, %v347_v16  ;;  %v356_v21 = vsel %vm348_vm1, %v347_v16, %v339_v9  ;;  %v351_v22 = vsel %vm348_vm1, %v337_v10, %v345_v18  ;;  %v355_v24 = vsel %vm348_vm1, %v345_v18, %v337_v10  ;;  %v1577_v10 = vld [vmem:[%s3164_s3 + $0x3] ss:$8 sm:$0x3] }
  0xfb   : > { %v376_v25 = vmul.f32 %v2391_v53, %v356_v21  ;;  %v377_v26 = vmul.f32 %v2394_v54, %v352_v20  ;;  %v374_v27 = vmul.f32 %v2391_v53, %v355_v24  ;;  %v375_v28 = vmul.f32 %v2394_v54, %v351_v22 }
  0xfc   : > { %v2461_v20 = vrot.slane %v1577_v10, %v2317_v14  ;;  %v2464_v21 = vrot.slane %v1577_v10, %v2308_v12  ;;  %v673_v10 = vpack.c.bf16 %v2201_v6, %v2204_v7  ;;  %v672_v6 = vpack.c.bf16 %v2187_v4, %v2194_v5 }
  0xfd   : > { %v381_v30 = vpop.permute.xlu1 %380  ;;  %v379_v31 = vpop.permute.xlu0 %378  ;;  %v661_v32 = vpack.c.bf16 %v377_v26, %v375_v28  ;;  %v660_v33 = vpack.c.bf16 %v376_v25, %v374_v27 }
  0xff   : > { %761 = vmatprep.subr.bf16.mxu0 %v661_v32 }
 0x100   : > { %762 = vmatpush1.bf16.msra.mxu0 %v660_v33 }
 0x101   : > { %v389_v36 = vpop.permute.xlu1 %388  ;;  %v387_v37 = vpop.permute.xlu0 %386 }
 0x102   : > { %v396_v38 = vsel %vm394_vm2, %v381_v30, %v389_v36  ;;  %v400_v39 = vsel %vm394_vm2, %v389_v36, %v381_v30  ;;  %v395_v40 = vsel %vm394_vm2, %v379_v31, %v387_v37  ;;  %v399_v41 = vsel %vm394_vm2, %v387_v37, %v379_v31 }
 0x103   : > { %v418_v42 = vmul.f32 %v2427_v34, %v400_v39  ;;  %v419_v43 = vmul.f32 %v2430_v35, %v396_v38  ;;  %v416_v46 = vmul.f32 %v2427_v34, %v399_v41  ;;  %v417_v47 = vmul.f32 %v2430_v35, %v395_v40 }
 0x105   : > { %v385_v48 = vpop.permute.xlu1 %384  ;;  %v383_v49 = vpop.permute.xlu0 %382  ;;  %v663_v50 = vpack.c.bf16 %v419_v43, %v417_v47  ;;  %v662_v55 = vpack.c.bf16 %v418_v42, %v416_v46 }
 0x107   : > { %763 = vmatprep.subr.bf16.mxu0 %v663_v50 }
 0x108   : > { %764 = vmatpush1.bf16.msra.mxu0 %v662_v55  ;;  %v1578_v55 = vld [vmem:[%s3164_s3 + $0x4] ss:$8 sm:$0x3] }
 0x109   : > { %v393_v56 = vpop.permute.xlu1 %392  ;;  %v391_v57 = vpop.permute.xlu0 %390 }
 0x10a   : > { %v398_v58 = vsel %vm394_vm2, %v385_v48, %v393_v56  ;;  %v402_v59 = vsel %vm394_vm2, %v393_v56, %v385_v48  ;;  %v397_v60 = vsel %vm394_vm2, %v383_v49, %v391_v57  ;;  %v401_v61 = vsel %vm394_vm2, %v391_v57, %v383_v49 }
 0x10b   : > { %v422_v62 = vmul.f32 %v2427_v34, %v402_v59  ;;  %v423_v63 = vmul.f32 %v2430_v35, %v398_v58  ;;  %v420_v8 = vmul.f32 %v2427_v34, %v401_v61  ;;  %v421_v9 = vmul.f32 %v2430_v35, %v397_v60 }
 0x10c   : > { %v671_v60 = vpack.c.bf16 %v2181_v2, %v2171_v0  ;;  %v2497_v61 = vrot.slane %v1578_v55, %v2308_v12 }
 0x10d   : > { %v427_v13 = vpop.permute.xlu1 %426  ;;  %v425_v15 = vpop.permute.xlu0 %424  ;;  %v665_v16 = vpack.c.bf16 %v423_v63, %v421_v9  ;;  %v664_v18 = vpack.c.bf16 %v422_v62, %v420_v8  ;;  %v670_v62 = vpack.c.bf16 %v2184_v3, %v2174_v1  ;;  %v2502_v63 = vrot.slane %v1578_v55, %v2317_v14 }
 0x10f   : > { %765 = vmatprep.subr.bf16.mxu0 %v665_v16 }
 0x110   : > { %766 = vmatpush1.bf16.msra.mxu0 %v664_v18 }
 0x111   : > { %v435_v22 = vpop.permute.xlu1 %434  ;;  %v433_v24 = vpop.permute.xlu0 %432 }
 0x112   : > { %v442_v25 = vsel %vm440_vm3, %v427_v13, %v435_v22  ;;  %v446_v26 = vsel %vm440_vm3, %v435_v22, %v427_v13  ;;  %v441_v27 = vsel %vm440_vm3, %v425_v15, %v433_v24  ;;  %v445_v28 = vsel %vm440_vm3, %v433_v24, %v425_v15 }
 0x113   : > { %v464_v29 = vmul.f32 %v2461_v20, %v446_v26  ;;  %v465_v30 = vmul.f32 %v2464_v21, %v442_v25  ;;  %v462_v31 = vmul.f32 %v2461_v20, %v445_v28  ;;  %v463_v32 = vmul.f32 %v2464_v21, %v441_v27 }
 0x115   : > { %v431_v33 = vpop.permute.xlu1 %430  ;;  %v429_v36 = vpop.permute.xlu0 %428  ;;  %v667_v37 = vpack.c.bf16 %v465_v30, %v463_v32  ;;  %v666_v38 = vpack.c.bf16 %v464_v29, %v462_v31 }
 0x117   : > { %767 = vmatprep.subr.bf16.mxu0 %v667_v37 }
 0x118   : > { %768 = vmatpush1.bf16.msra.mxu0 %v666_v38 }
 0x119   : > { %v439_v39 = vpop.permute.xlu1 %438  ;;  %v437_v40 = vpop.permute.xlu0 %436 }
 0x11a   : > { %v444_v41 = vsel %vm440_vm3, %v431_v33, %v439_v39  ;;  %v448_v42 = vsel %vm440_vm3, %v439_v39, %v431_v33  ;;  %v443_v43 = vsel %vm440_vm3, %v429_v36, %v437_v40  ;;  %v447_v46 = vsel %vm440_vm3, %v437_v40, %v429_v36  ;;  %v1579_v36 = vld [vmem:[%s3164_s3 + $0x5] ss:$8 sm:$0x3] }
 0x11b   : > { %v468_v47 = vmul.f32 %v2461_v20, %v448_v42  ;;  %v469_v48 = vmul.f32 %v2464_v21, %v444_v41  ;;  %v466_v49 = vmul.f32 %v2461_v20, %v447_v46  ;;  %v467_v50 = vmul.f32 %v2464_v21, %v443_v43 }
 0x11c   : > { %v2537_v41 = vrot.slane %v1579_v36, %v2317_v14  ;;  %v2540_v42 = vrot.slane %v1579_v36, %v2308_v12 }
 0x11d   : > { %v473_v56 = vpop.permute.xlu1 %472  ;;  %v471_v57 = vpop.permute.xlu0 %470  ;;  %v669_v58 = vpack.c.bf16 %v469_v48, %v467_v50  ;;  %v668_v59 = vpack.c.bf16 %v468_v47, %v466_v49 }
 0x11f   : > { %769 = vmatprep.subr.bf16.mxu0 %v669_v58 }
 0x120   : > { %770 = vmatpush1.bf16.msra.mxu0 %v668_v59 }
 0x121   : > { %v481_v8 = vpop.permute.xlu1 %480  ;;  %v479_v9 = vpop.permute.xlu0 %478  ;;  %771 = vmatprep.subr.bf16.mxu0 %v671_v60 }
 0x122   : > { %v488_v0 = vsel %vm486_vm4, %v473_v56, %v481_v8  ;;  %v492_v2 = vsel %vm486_vm4, %v481_v8, %v473_v56  ;;  %v487_v13 = vsel %vm486_vm4, %v471_v57, %v479_v9  ;;  %v491_v1 = vsel %vm486_vm4, %v479_v9, %v471_v57 }
 0x123   : > { %v511_v3 = vmul.f32 %v2497_v61, %v492_v2  ;;  %v509_v15 = vmul.f32 %v2497_v61, %v491_v1  ;;  %v510_v7 = vmul.f32 %v2502_v63, %v488_v0  ;;  %v508_v16 = vmul.f32 %v2502_v63, %v487_v13 }
 0x124   : > { %772 = vmatpush1.bf16.msra.mxu0 %v670_v62 }
 0x125   : > { %v477_v18 = vpop.permute.xlu1 %476  ;;  %v475_v22 = vpop.permute.xlu0 %474  ;;  %773 = vmatprep.subr.bf16.mxu0 %v673_v10  ;;  %v675_v24 = vpack.c.bf16 %v511_v3, %v509_v15  ;;  %v674_v27 = vpack.c.bf16 %v510_v7, %v508_v16  ;;  %v1580_v16 = vld [vmem:[%s3164_s3 + $0x6] ss:$8 sm:$0x3] }
 0x128   : > { %774 = vmatpush1.bf16.msra.mxu0 %v672_v6 }
 0x129   : > { %v485_v25 = vpop.permute.xlu1 %484  ;;  %v483_v26 = vpop.permute.xlu0 %482  ;;  %775 = vmatprep.subr.bf16.mxu0 %v675_v24 }
 0x12a   : > { %v490_v28 = vsel %vm486_vm4, %v477_v18, %v485_v25  ;;  %v494_v29 = vsel %vm486_vm4, %v485_v25, %v477_v18  ;;  %v489_v4 = vsel %vm486_vm4, %v475_v22, %v483_v26  ;;  %v493_v5 = vsel %vm486_vm4, %v483_v26, %v475_v22 }
 0x12b   : > { %v514_v30 = vmul.f32 %v2502_v63, %v490_v28  ;;  %v515_v31 = vmul.f32 %v2497_v61, %v494_v29  ;;  %v512_v32 = vmul.f32 %v2502_v63, %v489_v4  ;;  %v513_v33 = vmul.f32 %v2497_v61, %v493_v5 }
 0x12c   : > { %776 = vmatpush1.bf16.msra.mxu0 %v674_v27  ;;  %v2571_v26 = vrot.slane %v1580_v16, %v2317_v14  ;;  %v2574_v27 = vrot.slane %v1580_v16, %v2308_v12 }
 0x12d   : > { %v519_v37 = vpop.permute.xlu1 %518  ;;  %v517_v38 = vpop.permute.xlu0 %516  ;;  %v677_v39 = vpack.c.bf16 %v515_v31, %v513_v33  ;;  %v676_v40 = vpack.c.bf16 %v514_v30, %v512_v32 }
 0x12f   : > { %777 = vmatprep.subr.bf16.mxu0 %v677_v39 }
 0x130   : > { %778 = vmatpush1.bf16.msra.mxu0 %v676_v40 }
 0x131   : > { %v527_v43 = vpop.permute.xlu1 %526  ;;  %v525_v46 = vpop.permute.xlu0 %524 }
 0x132   : > { %v534_v47 = vsel %vm532_vm5, %v519_v37, %v527_v43  ;;  %v538_v48 = vsel %vm532_vm5, %v527_v43, %v519_v37  ;;  %v533_v49 = vsel %vm532_vm5, %v517_v38, %v525_v46  ;;  %v537_v50 = vsel %vm532_vm5, %v525_v46, %v517_v38 }
 0x133   : > { %v556_v55 = vmul.f32 %v2537_v41, %v534_v47  ;;  %v557_v56 = vmul.f32 %v2540_v42, %v538_v48  ;;  %v554_v57 = vmul.f32 %v2537_v41, %v533_v49  ;;  %v555_v58 = vmul.f32 %v2540_v42, %v537_v50 }
 0x135   : > { %v523_v59 = vpop.permute.xlu1 %522  ;;  %v521_v60 = vpop.permute.xlu0 %520  ;;  %v679_v62 = vpack.c.bf16 %v557_v56, %v555_v58  ;;  %v678_v8 = vpack.c.bf16 %v556_v55, %v554_v57 }
 0x137   : > { %779 = vmatprep.subr.bf16.mxu0 %v679_v62 }
 0x138   : > { %780 = vmatpush1.bf16.msra.mxu0 %v678_v8 }
 0x139   : > { %v531_v9 = vpop.permute.xlu1 %530  ;;  %v529_v10 = vpop.permute.xlu0 %528 }
 0x13a   : > { %v536_v0 = vsel %vm532_vm5, %v523_v59, %v531_v9  ;;  %v540_v2 = vsel %vm532_vm5, %v531_v9, %v523_v59  ;;  %v535_v13 = vsel %vm532_vm5, %v521_v60, %v529_v10  ;;  %v539_v1 = vsel %vm532_vm5, %v529_v10, %v521_v60  ;;  %v1581_v60 = vld [vmem:[%s3164_s3 + $0x7] ss:$8 sm:$0x3] }
 0x13b   : > { %v560_v3 = vmul.f32 %v2537_v41, %v536_v0  ;;  %v561_v15 = vmul.f32 %v2540_v42, %v540_v2  ;;  %v558_v6 = vmul.f32 %v2537_v41, %v535_v13  ;;  %v559_v7 = vmul.f32 %v2540_v42, %v539_v1  ;;  %v1729_v13 = vld [vmem:[#allocation5] ss:$12 sps:$4 sm:$0xff]   ;;  %v1732_v1 = vld [vmem:[#allocation5 + $0x1c] ss:$12 sps:$4 sm:$0xff]  }
 0x13c   : > { %v2605_v0 = vrot.slane %v1581_v60, %v2317_v14  ;;  %v2608_v2 = vrot.slane %v1581_v60, %v2308_v12 }
 0x13d   : > { %v565_v18 = vpop.permute.xlu1 %564  ;;  %v563_v22 = vpop.permute.xlu0 %562  ;;  %v681_v24 = vpack.c.bf16 %v561_v15, %v559_v7  ;;  %v680_v25 = vpack.c.bf16 %v560_v3, %v558_v6 }
 0x13f   : > { %781 = vmatprep.subr.bf16.mxu0 %v681_v24 }
 0x140   : > { %782 = vmatpush1.bf16.msra.mxu0 %v680_v25 }
 0x141   : > { %v573_v28 = vpop.permute.xlu1 %572  ;;  %v571_v29 = vpop.permute.xlu0 %570 }
 0x142   : > { %v580_v4 = vsel %vm578_vm6, %v565_v18, %v573_v28  ;;  %v584_v5 = vsel %vm578_vm6, %v573_v28, %v565_v18  ;;  %v579_v30 = vsel %vm578_vm6, %v563_v22, %v571_v29  ;;  %v583_v31 = vsel %vm578_vm6, %v571_v29, %v563_v22 }
 0x143   : > { %v602_v32 = vmul.f32 %v2571_v26, %v580_v4  ;;  %v603_v33 = vmul.f32 %v2574_v27, %v584_v5  ;;  %v600_v36 = vmul.f32 %v2571_v26, %v579_v30  ;;  %v601_v37 = vmul.f32 %v2574_v27, %v583_v31  ;;  %v1734_v5 = vld [vmem:[#allocation5 + $0x18] ss:$12 sps:$4 sm:$0xff]  }
 0x145   : > { %v569_v38 = vpop.permute.xlu1 %568  ;;  %v567_v39 = vpop.permute.xlu0 %566  ;;  %v683_v40 = vpack.c.bf16 %v603_v33, %v601_v37  ;;  %v682_v43 = vpack.c.bf16 %v602_v32, %v600_v36 }
 0x147   : > { %783 = vmatprep.subr.bf16.mxu0 %v683_v40 }
 0x148   : > { %784 = vmatpush1.bf16.msra.mxu0 %v682_v43 }
 0x149   : > { %v577_v46 = vpop.permute.xlu1 %576  ;;  %v575_v47 = vpop.permute.xlu0 %574 }
 0x14a   : > { %v582_v48 = vsel %vm578_vm6, %v569_v38, %v577_v46  ;;  %v586_v49 = vsel %vm578_vm6, %v577_v46, %v569_v38  ;;  %v581_v50 = vsel %vm578_vm6, %v567_v39, %v575_v47  ;;  %v585_v55 = vsel %vm578_vm6, %v575_v47, %v567_v39 }
 0x14b   : > { %v606_v56 = vmul.f32 %v2571_v26, %v582_v48  ;;  %v607_v57 = vmul.f32 %v2574_v27, %v586_v49  ;;  %v604_v58 = vmul.f32 %v2571_v26, %v581_v50  ;;  %v605_v59 = vmul.f32 %v2574_v27, %v585_v55  ;;  %v1735_v48 = vld [vmem:[#allocation5 + $0x8] ss:$12 sps:$4 sm:$0xff]   ;;  %v1736_v49 = vld [vmem:[#allocation5 + $0x20] ss:$12 sps:$4 sm:$0xff]  }
 0x14d   : > { %v611_v62 = vpop.permute.xlu1 %610  ;;  %v609_v8 = vpop.permute.xlu0 %608  ;;  %v685_v9 = vpack.c.bf16 %v607_v57, %v605_v59  ;;  %v684_v10 = vpack.c.bf16 %v606_v56, %v604_v58 }
 0x14f   : > { %785 = vmatprep.subr.bf16.mxu0 %v685_v9 }
 0x150   : > { %786 = vmatpush1.bf16.msra.mxu0 %v684_v10 }
 0x151   : > { %v619_v3 = vpop.permute.xlu1 %618  ;;  %v617_v15 = vpop.permute.xlu0 %616 }
 0x152   : > { %v626_v6 = vsel %vm624_vm7, %v611_v62, %v619_v3  ;;  %v630_v7 = vsel %vm624_vm7, %v619_v3, %v611_v62  ;;  %v625_v16 = vsel %vm624_vm7, %v609_v8, %v617_v15  ;;  %v629_v14 = vsel %vm624_vm7, %v617_v15, %v609_v8 }
 0x153   : > { %v648_v12 = vmul.f32 %v2605_v0, %v626_v6  ;;  %v649_v18 = vmul.f32 %v2608_v2, %v630_v7  ;;  %v646_v22 = vmul.f32 %v2605_v0, %v625_v16  ;;  %v647_v24 = vmul.f32 %v2608_v2, %v629_v14  ;;  %788 = vmatmul.mubr.bf16.vlgmr.msra.gmra.mrb[0].mxu0 %v1729_v13 }
 0x154   : > { %797 = vmatprep.mubr.bf16.mxu0 %v1732_v1 }
 0x155   : > { %v686_v25 = vpack.c.bf16 %v648_v12, %v646_v22  ;;  %v615_v28 = vpop.permute.xlu1 %614  ;;  %v613_v29 = vpop.permute.xlu0 %612  ;;  %v687_v4 = vpack.c.bf16 %v649_v18, %v647_v24 }
 0x157   : > { %808 = vmatprep.subr.bf16.mxu0 %v687_v4 }
 0x158   : > { %809 = vmatpush1.bf16.msra.mxu0 %v686_v25 }
 0x159   : > { %v623_v30 = vpop.permute.xlu1 %622  ;;  %v621_v31 = vpop.permute.xlu0 %620 }
 0x15a   : > { %v628_v32 = vsel %vm624_vm7, %v615_v28, %v623_v30  ;;  %v632_v33 = vsel %vm624_vm7, %v623_v30, %v615_v28  ;;  %v627_v36 = vsel %vm624_vm7, %v613_v29, %v621_v31  ;;  %v631_v37 = vsel %vm624_vm7, %v621_v31, %v613_v29  ;;  %v1739_v30 = vld [vmem:[#allocation7 + $0x4] ss:$12 sps:$4 sm:$0xff]  }
 0x15b   : > { %v652_v38 = vmul.f32 %v2605_v0, %v628_v32  ;;  %v653_v39 = vmul.f32 %v2608_v2, %v632_v33  ;;  %v650_v40 = vmul.f32 %v2605_v0, %v627_v36  ;;  %v651_v43 = vmul.f32 %v2608_v2, %v631_v37  ;;  %798 = vmatmul.mubr.bf16.gmra.mrb[4].mxu0 %v1734_v5 }
 0x15c   : > { %840 = vmatprep.mubr.bf16.mxu0 %v1946_v23  ;;  %1253 = vmatprep.mubr.bf16.mxu1 %v1739_v30 }
 0x15d   : > { %v688_v46 = vpack.c.bf16 %v652_v38, %v650_v40  ;;  %v689_v47 = vpack.c.bf16 %v653_v39, %v651_v43 }
 0x15f   : > { %810 = vmatprep.subr.bf16.mxu0 %v689_v47 }
 0x160   : > { %811 = vmatpush1.bf16.msra.mxu0 %v688_v46  ;;  %v1947_v46 = vmov 1  }
 0x161   : > { %1727 = vset.pattern.permute.xlu1 %v1947_v46  ;;  %1728 = vset.pattern.permute.xlu0 %v1947_v46 }
 0x163   : > { %1588 = vmatmul.mubr.msk.bf16.vlgmr.msra.gmra.mrb[0].mxu0 %vm748_vm8, %v1735_v48 }
 0x164   : > { %850 = vmatprep.mubr.bf16.mxu0 %v1946_v23 }
 0x16a   : > { %v706_v58 = vpop.permute.xlu1 %705 }
 0x16b   : > { %1589 = vmatmul.mubr.msk.bf16.gmra.mrb[4].mxu0 %vm748_vm8, %v1736_v49  ;;  %v701_v50 = vpop.permute.xlu0 %700 }
 0x16e   : > { %v711_v14 = vpop.permute.xlu1 %710 }
 0x16f   : > { %v716_v18 = vpop.permute.xlu0 %715 }
 0x236   : > { %v842_v55 = vpop.f32.mrb[0].mxu0 }
 0x237   : > { %v1609_v56 = vadd.f32 %v842_v55, %v701_v50  ;;  %v844_v57 = vpop.f32.mrb[1].mxu0 }
 0x238   : > { %v846_v59 = vpop.f32.mrb[2].mxu0  ;;  %v1610_v15 = vadd.f32 %v844_v57, %v701_v50 }
 0x239   : > { %v2638_v60 = vmax.f32 %v1609_v56, 0.0  ;;  %v1611_v62 = vadd.f32 %v846_v59, %v706_v58  ;;  %v848_v8 = vpop.f32.mrb[3].mxu0 }
 0x23a   : > { %v1612_v6 = vadd.f32 %v848_v8, %v706_v58  ;;  %v2660_v7 = vmax.f32 %v1610_v15, 0.0 }
 0x23b   : > { %v2640_v9 = vmax.f32 %v1611_v62, 0.0  ;;  %869 = vrot.lane.b32.xlu1 %v2638_v60, %s1938_s24 }
 0x23c   : > { %v2664_v16 = vmax.f32 %v1612_v6, 0.0 }
 0x23d   : > { %871 = vrot.lane.b32.xlu0 %v2640_v9, %s1938_s24 }
 0x23e   : > { %v852_v10 = vpop.f32.mrb[4].mxu0 }
 0x23f   : > { %v854_v13 = vpop.f32.mrb[5].mxu0  ;;  %901 = vrot.lane.b32.xlu1 %v2638_v60, %s1939_s26  ;;  %v1613_v12 = vadd.f32 %v852_v10, %v711_v14 }
 0x240   : > { %v856_v1 = vpop.f32.mrb[6].mxu0  ;;  %v1614_v28 = vadd.f32 %v854_v13, %v711_v14 }
 0x241   : > { %v858_v3 = vpop.f32.mrb[7].mxu0  ;;  %903 = vrot.lane.b32.xlu0 %v2640_v9, %s1939_s26  ;;  %v1615_v22 = vadd.f32 %v856_v1, %v716_v18  ;;  %v2680_v24 = vmax.f32 %v1613_v12, 0.0 }
 0x242   : > { %v1616_v29 = vadd.f32 %v858_v3, %v716_v18  ;;  %v2700_v4 = vmax.f32 %v1614_v28, 0.0 }
 0x243   : > { %933 = vrot.lane.b32.xlu1 %v2638_v60, %s1940_s8  ;;  %v2684_v25 = vmax.f32 %v1615_v22, 0.0 }
 0x244   : > { %v2704_v5 = vmax.f32 %v1616_v29, 0.0 }
 0x245   : > { %935 = vrot.lane.b32.xlu0 %v2640_v9, %s1940_s8 }
 0x247   : > { %965 = vrot.lane.b32.xlu1 %v2638_v60, %s1941_s10 }
 0x249   : > { %967 = vrot.lane.b32.xlu0 %v2640_v9, %s1941_s10 }
 0x24b   : > { %997 = vrot.lane.b32.xlu1 %v2638_v60, %s1942_s11 }
 0x24d   : > { %999 = vrot.lane.b32.xlu0 %v2640_v9, %s1942_s11 }
 0x24f   : > { %877 = vrot.lane.b32.xlu1 %v2660_v7, %s1938_s24 }
 0x251   : > { %879 = vrot.lane.b32.xlu0 %v2664_v16, %s1938_s24 }
 0x253   : > { %909 = vrot.lane.b32.xlu1 %v2660_v7, %s1939_s26 }
 0x255   : > { %911 = vrot.lane.b32.xlu0 %v2664_v16, %s1939_s26 }
 0x257   : > { %941 = vrot.lane.b32.xlu1 %v2660_v7, %s1940_s8 }
 0x259   : > { %943 = vrot.lane.b32.xlu0 %v2664_v16, %s1940_s8 }
 0x25b   : > { %973 = vrot.lane.b32.xlu1 %v2660_v7, %s1941_s10 }
 0x25d   : > { %975 = vrot.lane.b32.xlu0 %v2664_v16, %s1941_s10 }
 0x25f   : > { %873 = vrot.lane.b32.xlu1 %v2680_v24, %s1938_s24 }
 0x261   : > { %875 = vrot.lane.b32.xlu0 %v2684_v25, %s1938_s24 }
 0x263   : > { %905 = vrot.lane.b32.xlu1 %v2680_v24, %s1939_s26 }
 0x265   : > { %907 = vrot.lane.b32.xlu0 %v2684_v25, %s1939_s26 }
 0x267   : > { %937 = vrot.lane.b32.xlu1 %v2680_v24, %s1940_s8 }
 0x269   : > { %939 = vrot.lane.b32.xlu0 %v2684_v25, %s1940_s8 }
 0x26b   : > { %969 = vrot.lane.b32.xlu1 %v2680_v24, %s1941_s10 }
 0x26d   : > { %971 = vrot.lane.b32.xlu0 %v2684_v25, %s1941_s10 }
 0x26f   : > { %881 = vrot.lane.b32.xlu1 %v2700_v4, %s1938_s24 }
 0x271   : > { %883 = vrot.lane.b32.xlu0 %v2704_v5, %s1938_s24  ;;  %s1470_s24 = sshll.u32 %s271_s16, 4  ;;  %s3116_s24 = int_to_ptr.vmem [resolvable:$true] %s1470_s24 }
 0x273   : > { %1005 = vrot.lane.b32.xlu1 %v2660_v7, %s1942_s11 }
 0x275   : > { %1007 = vrot.lane.b32.xlu0 %v2664_v16, %s1942_s11 }
 0x277   : > { %913 = vrot.lane.b32.xlu1 %v2700_v4, %s1939_s26 }
 0x279   : > { %915 = vrot.lane.b32.xlu0 %v2704_v5, %s1939_s26 }
 0x27b   : > { %945 = vrot.lane.b32.xlu1 %v2700_v4, %s1940_s8 }
 0x27d   : > { %1003 = vrot.lane.b32.xlu0 %v2684_v25, %s1942_s11 }
 0x27f   : > { %977 = vrot.lane.b32.xlu1 %v2700_v4, %s1941_s10 }
 0x281   : > { %947 = vrot.lane.b32.xlu0 %v2704_v5, %s1940_s8 }
 0x283   : > { %1001 = vrot.lane.b32.xlu1 %v2680_v24, %s1942_s11 }
 0x285   : > { %1031 = vrot.lane.b32.xlu0 %v2640_v9, %s1943_s28 }
 0x287   : > { %1009 = vrot.lane.b32.xlu1 %v2700_v4, %s1942_s11 }
 0x289   : > { %979 = vrot.lane.b32.xlu0 %v2704_v5, %s1941_s10  ;;  %s3114_s10 = scalar_lea.hbm %s3166_s5, %s1608_s13 }
 0x28b   : > { %1029 = vrot.lane.b32.xlu1 %v2638_v60, %s1943_s28 }
 0x28d   : > { %1039 = vrot.lane.b32.xlu0 %v2664_v16, %s1943_s28 }
 0x28f   : > { %1037 = vrot.lane.b32.xlu1 %v2660_v7, %s1943_s28 }
 0x291   : > { %1035 = vrot.lane.b32.xlu0 %v2684_v25, %s1943_s28 }
 0x293   : > { %1033 = vrot.lane.b32.xlu1 %v2680_v24, %s1943_s28 }
 0x295   : > { %1063 = vrot.lane.b32.xlu0 %v2640_v9, %s1944_s30 }
 0x297   : > { %1041 = vrot.lane.b32.xlu1 %v2700_v4, %s1943_s28 }
 0x299   : > { %1011 = vrot.lane.b32.xlu0 %v2704_v5, %s1942_s11  ;;  %s1859_s11 = scalar_lea.vmem %s3116_s24, 1024 }
 0x29a   : > { %p1860_p11 = scmp.ne.s32.totalorder %s3116_s24, %s1859_s11 }
 0x29b   : > { %1061 = vrot.lane.b32.xlu1 %v2638_v60, %s1944_s30 }
 0x29c   : > { %p1861_p1 = pnand %p1860_p11, %p3182_p0 }
 0x29d   : > { %1071 = vrot.lane.b32.xlu0 %v2664_v16, %s1944_s30 }
 0x29e   : > { %p1862_p3 = pneg %p1861_p1 }
 0x29f   : > { %1069 = vrot.lane.b32.xlu1 %v2660_v7, %s1944_s30 }
 0x2a1   : > { %1043 = vrot.lane.b32.xlu0 %v2704_v5, %s1943_s28  ;;  %s1950_s28 = smov [#allocation8]  }
 0x2a3   : > { %1065 = vrot.lane.b32.xlu1 %v2680_v24, %s1944_s30 }
 0x2a5   : > { %1067 = vrot.lane.b32.xlu0 %v2684_v25, %s1944_s30 }
 0x2a7   : > { %1073 = vrot.lane.b32.xlu1 %v2700_v4, %s1944_s30 }
 0x2a9   : > { %1075 = vrot.lane.b32.xlu0 %v2704_v5, %s1944_s30  ;;  %s1863_s30 = sshll.u32 %s1950_s28, 4  ;;  %s1864_s30 = int_to_ptr.vmem [resolvable:$false] %s1863_s30 }
 0x2aa   : > { %p1866_p7 = scmp.lt.s32.totalorder %s3116_s24, %s1864_s30 }
 0x2ab   : > { %1093 = vrot.lane.b32.xlu1 %v2638_v60, %s1945_s15 }
 0x2ad   : > { %1095 = vrot.lane.b32.xlu0 %v2640_v9, %s1945_s15  ;;  %v870_v31 = vpop.permute.xlu1 %869 }
 0x2af   : > { %v872_v32 = vpop.permute.xlu0 %871  ;;  %1101 = vrot.lane.b32.xlu1 %v2660_v7, %s1945_s15 }
 0x2b1   : > { %1103 = vrot.lane.b32.xlu0 %v2664_v16, %s1945_s15  ;;  %v902_v33 = vpop.permute.xlu1 %901 }
 0x2b3   : > { %v904_v36 = vpop.permute.xlu0 %903  ;;  %1097 = vrot.lane.b32.xlu1 %v2680_v24, %s1945_s15 }
 0x2b5   : > { %1099 = vrot.lane.b32.xlu0 %v2684_v25, %s1945_s15  ;;  %v2778_v37 = vpop.permute.xlu1 %933 }
 0x2b7   : > { %v2780_v38 = vpop.permute.xlu0 %935  ;;  %1105 = vrot.lane.b32.xlu1 %v2700_v4, %s1945_s15 }
 0x2b9   : > { %1107 = vrot.lane.b32.xlu0 %v2704_v5, %s1945_s15  ;;  %v2786_v39 = vpop.permute.xlu1 %965  ;;  %s1865_s15 = scalar_lea.vmem %s1864_s30, 2048 }
 0x2ba   : > { %p1867_p9 = scmp.lt.s32.totalorder %s1865_s15, %s1859_s11 }
 0x2bb   : > { %v2788_v40 = vpop.permute.xlu0 %967  ;;  %1170 = vperm.xlu1 %1727, %v2372_v45  }
 0x2bc   : > { %p1868_p12 = por %p1867_p9, %p1866_p7 }
 0x2bd   : > { %v998_v43 = vpop.permute.xlu1 %997  ;;  %1174 = vperm.xlu0 %1728, %v2367_v44  }
 0x2be   : > { %p1869_p2 = pnand %p1868_p12, %p1862_p3 }
 0x2bf   : > { %v1000_v47 = vpop.permute.xlu0 %999  ;;  %1178 = vperm.xlu1 %1727, %v2382_v51  }
 0x2c1   : > { %v878_v48 = vpop.permute.xlu1 %877 }
 0x2c2   : > { %v885_v49 = vsel %vm303_vm0, %v870_v31, %v878_v48  ;;  %v889_v50 = vsel %vm303_vm0, %v878_v48, %v870_v31 }
 0x2c3   : > { %v880_v55 = vpop.permute.xlu0 %879  ;;  %v893_v45 = vmul.f32 %v889_v50, %v2330_v19  ;;  %v894_v59 = vmul.f32 %v885_v49, %v2321_v17  ;;  %1182 = vperm.xlu1 %1727, %v2387_v52  }
 0x2c4   : > { %v886_v56 = vsel %vm303_vm0, %v872_v32, %v880_v55  ;;  %v890_v57 = vsel %vm303_vm0, %v880_v55, %v872_v32 }
 0x2c5   : > { %v895_v44 = vmul.f32 %v890_v57, %v2330_v19  ;;  %v910_v58 = vpop.permute.xlu1 %909  ;;  %v896_v62 = vmul.f32 %v886_v56, %v2321_v17 }
 0x2c6   : > { %v917_v48 = vsel %vm348_vm1, %v902_v33, %v910_v58  ;;  %v921_v49 = vsel %vm348_vm1, %v910_v58, %v902_v33 }
 0x2c7   : > { %v912_v8 = vpop.permute.xlu0 %911  ;;  %v1126_v10 = vpack.c.bf16 %v896_v62, %v894_v59  ;;  %v1125_v13 = vpack.c.bf16 %v895_v44, %v893_v45 }
 0x2c8   : > { %v918_v30 = vsel %vm348_vm1, %v904_v36, %v912_v8  ;;  %v922_v55 = vsel %vm348_vm1, %v912_v8, %v904_v36 }
 0x2c9   : > { %1221 = vmatprep.subr.bf16.mxu1 %v1126_v10  ;;  %v2806_v51 = vpop.permute.xlu1 %941  ;;  %v928_v56 = vmul.f32 %v918_v30, %v2394_v54  ;;  %v926_v10 = vmul.f32 %v917_v48, %v2394_v54 }
 0x2ca   : > { %1222 = vmatpush1.bf16.msra.mxu1 %v1125_v13  ;;  %v925_v13 = vmul.f32 %v921_v49, %v2391_v53 }
 0x2cb   : > { %v944_v1 = vpop.permute.xlu0 %943 }
 0x2cd   : > { %v2808_v3 = vpop.permute.xlu1 %973 }
 0x2cf   : > { %v2810_v15 = vpop.permute.xlu0 %975 }
 0x2d1   : > { %v874_v6 = vpop.permute.xlu1 %873 }
 0x2d3   : > { %v876_v14 = vpop.permute.xlu0 %875 }
 0x2d5   : > { %v906_v12 = vpop.permute.xlu1 %905 }
 0x2d7   : > { %v908_v18 = vpop.permute.xlu0 %907 }
 0x2d9   : > { %v2812_v22 = vpop.permute.xlu1 %937 }
 0x2db   : > { %v2814_v28 = vpop.permute.xlu0 %939 }
 0x2dd   : > { %v2816_v29 = vpop.permute.xlu1 %969 }
 0x2df   : > { %v2818_v52 = vpop.permute.xlu0 %971 }
 0x2e1   : > { %v882_v31 = vpop.permute.xlu1 %881 }
 0x2e2   : > { %v887_v32 = vsel %vm303_vm0, %v874_v6, %v882_v31  ;;  %v891_v46 = vsel %vm303_vm0, %v882_v31, %v874_v6  ;;  %v927_v6 = vmul.f32 %v922_v55, %v2391_v53 }
 0x2e3   : > { %v884_v50 = vpop.permute.xlu0 %883  ;;  %v897_v44 = vmul.f32 %v891_v46, %v2330_v19  ;;  %v898_v59 = vmul.f32 %v887_v32, %v2321_v17  ;;  %v1130_v46 = vpack.c.bf16 %v928_v56, %v926_v10  ;;  %v949_v56 = vsel %vm394_vm2, %v2778_v37, %v2806_v51 }
 0x2e4   : > { %v888_v57 = vsel %vm303_vm0, %v876_v14, %v884_v50  ;;  %v892_v45 = vsel %vm303_vm0, %v884_v50, %v876_v14 }
 0x2e5   : > { %v899_v62 = vmul.f32 %v892_v45, %v2330_v19  ;;  %v900_v33 = vmul.f32 %v888_v57, %v2321_v17  ;;  %v1006_v58 = vpop.permute.xlu1 %1005  ;;  %v950_v17 = vsel %vm394_vm2, %v2780_v38, %v944_v1 }
 0x2e6   : > { %v1013_v36 = vsel %vm486_vm4, %v998_v43, %v1006_v58  ;;  %v1017_v8 = vsel %vm486_vm4, %v1006_v58, %v998_v43 }
 0x2e7   : > { %v1008_v14 = vpop.permute.xlu0 %1007  ;;  %v1128_v30 = vpack.c.bf16 %v900_v33, %v898_v59  ;;  %v1127_v31 = vpack.c.bf16 %v899_v62, %v897_v44  ;;  %v2856_v43 = vmul.f32 %v1013_v36, %v2502_v63  ;;  %v2859_v48 = vmul.f32 %v1017_v8, %v2497_v61 }
 0x2e8   : > { %v1014_v19 = vsel %vm486_vm4, %v1000_v47, %v1008_v14  ;;  %v1018_v32 = vsel %vm486_vm4, %v1008_v14, %v1000_v47  ;;  %v1129_v44 = vpack.c.bf16 %v927_v6, %v925_v13  ;;  %v954_v33 = vsel %vm394_vm2, %v944_v1, %v2780_v38 }
 0x2e9   : > { %v2862_v49 = vmul.f32 %v1014_v19, %v2502_v63  ;;  %v2865_v50 = vmul.f32 %v1018_v32, %v2497_v61  ;;  %1223 = vmatprep.subr.bf16.mxu1 %v1128_v30  ;;  %v914_v55 = vpop.permute.xlu1 %913  ;;  %v953_v38 = vsel %vm394_vm2, %v2806_v51, %v2778_v37  ;;  %v958_v1 = vmul.f32 %v949_v56, %v2430_v35 }
 0x2ea   : > { %v919_v57 = vsel %vm348_vm1, %v906_v12, %v914_v55  ;;  %v923_v47 = vsel %vm348_vm1, %v914_v55, %v906_v12  ;;  %1224 = vmatpush1.bf16.msra.mxu1 %v1127_v31  ;;  %v960_v12 = vmul.f32 %v950_v17, %v2430_v35  ;;  %v959_v30 = vmul.f32 %v954_v33, %v2427_v34 }
 0x2eb   : > { %v916_v45 = vpop.permute.xlu0 %915  ;;  %1225 = vmatprep.subr.bf16.mxu1 %v1130_v46  ;;  %v1146_v59 = vpack.c.bf16 %v2865_v50, %v2859_v48  ;;  %v1145_v62 = vpack.c.bf16 %v2862_v49, %v2856_v43  ;;  %v929_v36 = vmul.f32 %v923_v47, %v2391_v53  ;;  %v930_v8 = vmul.f32 %v919_v57, %v2394_v54 }
 0x2ec   : > { %v920_v58 = vsel %vm348_vm1, %v908_v18, %v916_v45  ;;  %v924_v10 = vsel %vm348_vm1, %v916_v45, %v908_v18  ;;  %v957_v19 = vmul.f32 %v953_v38, %v2427_v34  ;;  %v1134_v32 = vpack.c.bf16 %v960_v12, %v958_v1 }
 0x2ed   : > { %v931_v13 = vmul.f32 %v924_v10, %v2391_v53  ;;  %v932_v6 = vmul.f32 %v920_v58, %v2394_v54  ;;  %v946_v14 = vpop.permute.xlu1 %945  ;;  %v982_v53 = vsel %vm440_vm3, %v2788_v40, %v2810_v15  ;;  %v981_v46 = vsel %vm440_vm3, %v2786_v39, %v2808_v3 }
 0x2ee   : > { %1226 = vmatpush1.bf16.msra.mxu1 %v1129_v44  ;;  %v951_v37 = vsel %vm394_vm2, %v2812_v22, %v946_v14  ;;  %v955_v51 = vsel %vm394_vm2, %v946_v14, %v2812_v22  ;;  %v1133_v57 = vpack.c.bf16 %v959_v30, %v957_v19  ;;  %v986_v47 = vsel %vm440_vm3, %v2810_v15, %v2788_v40 }
 0x2ef   : > { %v2897_v18 = vpop.permute.xlu0 %1003  ;;  %v1132_v31 = vpack.c.bf16 %v932_v6, %v930_v8  ;;  %v1131_v17 = vpack.c.bf16 %v931_v13, %v929_v36  ;;  %v992_v56 = vmul.f32 %v982_v53, %v2464_v21  ;;  %v961_v44 = vmul.f32 %v955_v51, %v2427_v34 }
 0x2f0   : > { %v962_v33 = vmul.f32 %v951_v37, %v2430_v35  ;;  %v985_v40 = vsel %vm440_vm3, %v2808_v3, %v2786_v39  ;;  %v990_v15 = vmul.f32 %v981_v46, %v2464_v21  ;;  %v991_v13 = vmul.f32 %v986_v47, %v2461_v20 }
 0x2f1   : > { %1227 = vmatprep.subr.bf16.mxu1 %v1132_v31  ;;  %v978_v54 = vpop.permute.xlu1 %977  ;;  %v1142_v46 = vpack.c.bf16 %v2664_v16, %v2660_v7 }
 0x2f2   : > { %1228 = vmatpush1.bf16.msra.mxu1 %v1131_v17  ;;  %v1138_v14 = vpack.c.bf16 %v992_v56, %v990_v15  ;;  %v987_v39 = vsel %vm440_vm3, %v978_v54, %v2816_v29  ;;  %v1143_v56 = vpack.c.bf16 %v2684_v25, %v2680_v24 }
 0x2f3   : > { %v948_v55 = vpop.permute.xlu0 %947  ;;  %1229 = vmatprep.subr.bf16.mxu1 %v1134_v32  ;;  %v993_v31 = vmul.f32 %v987_v39, %v2461_v20 }
 0x2f4   : > { %v952_v22 = vsel %vm394_vm2, %v2814_v28, %v948_v55  ;;  %v956_v45 = vsel %vm394_vm2, %v948_v55, %v2814_v28  ;;  %v1141_v55 = vpack.c.bf16 %v2640_v9, %v2638_v60 }
 0x2f5   : > { %v963_v12 = vmul.f32 %v956_v45, %v2427_v34  ;;  %v964_v58 = vmul.f32 %v952_v22, %v2430_v35  ;;  %v1002_v10 = vpop.permute.xlu1 %1001  ;;  %v989_v34 = vmul.f32 %v985_v40, %v2461_v20  ;;  %v983_v35 = vsel %vm440_vm3, %v2816_v29, %v978_v54 }
 0x2f6   : > { %1230 = vmatpush1.bf16.msra.mxu1 %v1133_v57  ;;  %v994_v17 = vmul.f32 %v983_v35, %v2464_v21 }
 0x2f7   : > { %v1032_v36 = vpop.permute.xlu0 %1031  ;;  %v1136_v8 = vpack.c.bf16 %v964_v58, %v962_v33  ;;  %v1135_v28 = vpack.c.bf16 %v963_v12, %v961_v44  ;;  %v1137_v30 = vpack.c.bf16 %v991_v13, %v989_v34 }
 0x2f9   : > { %1231 = vmatprep.subr.bf16.mxu1 %v1136_v8  ;;  %v1010_v6 = vpop.permute.xlu1 %1009 }
 0x2fa   : > { %1232 = vmatpush1.bf16.msra.mxu1 %v1135_v28  ;;  %v1015_v47 = vsel %vm486_vm4, %v1002_v10, %v1010_v6  ;;  %v1019_v16 = vsel %vm486_vm4, %v1010_v6, %v1002_v10 }
 0x2fb   : > { %v980_v3 = vpop.permute.xlu0 %979  ;;  %1233 = vmatprep.subr.bf16.mxu1 %v1138_v14  ;;  %v1025_v9 = vmul.f32 %v1015_v47, %v2502_v63  ;;  %v1026_v45 = vmul.f32 %v1019_v16, %v2497_v61 }
 0x2fc   : > { %v984_v38 = vsel %vm440_vm3, %v2818_v52, %v980_v3  ;;  %v988_v1 = vsel %vm440_vm3, %v980_v3, %v2818_v52 }
 0x2fd   : > { %v995_v19 = vmul.f32 %v988_v1, %v2461_v20  ;;  %v996_v29 = vmul.f32 %v984_v38, %v2464_v21  ;;  %v1030_v53 = vpop.permute.xlu1 %1029  ;;  %v1144_v20 = vpack.c.bf16 %v2704_v5, %v2700_v4 }
 0x2fe   : > { %1234 = vmatpush1.bf16.msra.mxu1 %v1137_v30 }
 0x2ff   : > { %v1040_v54 = vpop.permute.xlu0 %1039  ;;  %v1140_v32 = vpack.c.bf16 %v996_v29, %v994_v17  ;;  %v1139_v37 = vpack.c.bf16 %v995_v19, %v993_v31 }
 0x300   : > { %v1050_v5 = vsel %vm532_vm5, %v1040_v54, %v1032_v36  ;;  %v1046_v33 = vsel %vm532_vm5, %v1032_v36, %v1040_v54 }
 0x301   : > { %1235 = vmatprep.subr.bf16.mxu1 %v1140_v32  ;;  %v1038_v51 = vpop.permute.xlu1 %1037  ;;  %v1056_v12 = vmul.f32 %v1050_v5, %v2540_v42 }
 0x302   : > { %1236 = vmatpush1.bf16.msra.mxu1 %v1139_v37  ;;  %v1049_v60 = vsel %vm532_vm5, %v1038_v51, %v1030_v53  ;;  %v1045_v24 = vsel %vm532_vm5, %v1030_v53, %v1038_v51 }
 0x303   : > { %v1036_v52 = vpop.permute.xlu0 %1035  ;;  %1237 = vmatprep.subr.bf16.mxu1 %v1142_v46  ;;  %v1054_v44 = vmul.f32 %v1049_v60, %v2540_v42 }
 0x305   : > { %v1034_v57 = vpop.permute.xlu1 %1033  ;;  %v1150_v8 = vpack.c.bf16 %v1056_v12, %v1054_v44 }
 0x306   : > { %1238 = vmatpush1.bf16.msra.mxu1 %v1141_v55 }
 0x307   : > { %v1064_v21 = vpop.permute.xlu0 %1063  ;;  %1239 = vmatprep.subr.bf16.mxu1 %v1144_v20 }
 0x309   : > { %v1042_v7 = vpop.permute.xlu1 %1041 }
 0x30a   : > { %1240 = vmatpush1.bf16.msra.mxu1 %v1143_v56  ;;  %v1051_v15 = vsel %vm532_vm5, %v1042_v7, %v1034_v57 }
 0x30b   : > { %v1012_v4 = vpop.permute.xlu0 %1011  ;;  %1241 = vmatprep.subr.bf16.mxu1 %v1146_v59  ;;  %v1058_v13 = vmul.f32 %v1051_v15, %v2540_v42 }
 0x30c   : > { %v1016_v25 = vsel %vm486_vm4, %v2897_v18, %v1012_v4  ;;  %v1020_v22 = vsel %vm486_vm4, %v1012_v4, %v2897_v18  ;;  %v1053_v18 = vmul.f32 %v1045_v24, %v2537_v41  ;;  %v1737_v4 = vld [vmem:[#allocation7] ss:$12 sps:$4 sm:$0xff]  }
 0x30d   : > { %v1027_v48 = vmul.f32 %v1016_v25, %v2502_v63  ;;  %v1028_v50 = vmul.f32 %v1020_v22, %v2497_v61  ;;  %v1062_v59 = vpop.permute.xlu1 %1061  ;;  %v1047_v63 = vsel %vm532_vm5, %v1034_v57, %v1042_v7  ;;  %v1055_v61 = vmul.f32 %v1046_v33, %v2537_v41  ;;  %v1740_v25 = vld [vmem:[#allocation7 + $0x1c] ss:$12 sps:$4 sm:$0xff]  }
 0x30e   : > { %1242 = vmatpush1.bf16.msra.mxu1 %v1145_v62  ;;  %v1057_v49 = vmul.f32 %v1047_v63, %v2537_v41 }
 0x30f   : > { %v1072_v58 = vpop.permute.xlu0 %1071  ;;  %v1148_v10 = vpack.c.bf16 %v1028_v50, %v1026_v45  ;;  %v1147_v40 = vpack.c.bf16 %v1027_v48, %v1025_v9  ;;  %v1149_v28 = vpack.c.bf16 %v1055_v61, %v1053_v18 }
 0x310   : > { %v1082_v6 = vsel %vm578_vm6, %v1072_v58, %v1064_v21  ;;  %v1078_v30 = vsel %vm578_vm6, %v1064_v21, %v1072_v58 }
 0x311   : > { %v1070_v36 = vpop.permute.xlu1 %1069  ;;  %1243 = vmatprep.subr.bf16.mxu1 %v1148_v10  ;;  %v1088_v31 = vmul.f32 %v1082_v6, %v2574_v27  ;;  %v1087_v37 = vmul.f32 %v1078_v30, %v2571_v26  ;;  %v1742_v10 = vld [vmem:[#allocation7 + $0x18] ss:$12 sps:$4 sm:$0xff]   ;;  %v1743_v6 = vld [vmem:[#allocation7 + $0x8] ss:$12 sps:$4 sm:$0xff]  }
 0x312   : > { %v1081_v43 = vsel %vm578_vm6, %v1070_v36, %v1062_v59  ;;  %1244 = vmatpush1.bf16.msra.mxu1 %v1147_v40  ;;  %v1077_v35 = vsel %vm578_vm6, %v1062_v59, %v1070_v36 }
 0x313   : > { %v1044_v62 = vpop.permute.xlu0 %1043  ;;  %1245 = vmatprep.subr.bf16.mxu1 %v1150_v8  ;;  %v1086_v39 = vmul.f32 %v1081_v43, %v2574_v27  ;;  %v1085_v53 = vmul.f32 %v1077_v35, %v2571_v26 }
 0x314   : > { %v1048_v14 = vsel %vm532_vm5, %v1036_v52, %v1044_v62  ;;  %v1052_v34 = vsel %vm532_vm5, %v1044_v62, %v1036_v52 }
 0x315   : > { %v1059_v3 = vmul.f32 %v1048_v14, %v2537_v41  ;;  %v1060_v38 = vmul.f32 %v1052_v34, %v2540_v42  ;;  %v1066_v1 = vpop.permute.xlu1 %1065  ;;  %v1154_v32 = vpack.c.bf16 %v1088_v31, %v1086_v39  ;;  %v1153_v55 = vpack.c.bf16 %v1087_v37, %v1085_v53 }
 0x316   : > { %1246 = vmatpush1.bf16.msra.mxu1 %v1149_v28 }
 0x317   : > { %v1068_v17 = vpop.permute.xlu0 %1067  ;;  %v1152_v19 = vpack.c.bf16 %v1060_v38, %v1058_v13  ;;  %v1151_v29 = vpack.c.bf16 %v1059_v3, %v1057_v49 }
 0x319   : > { %v1074_v54 = vpop.permute.xlu1 %1073  ;;  %1247 = vmatprep.subr.bf16.mxu1 %v1152_v19 }
 0x31a   : > { %v1079_v41 = vsel %vm578_vm6, %v1066_v1, %v1074_v54  ;;  %v1083_v42 = vsel %vm578_vm6, %v1074_v54, %v1066_v1  ;;  %1248 = vmatpush1.bf16.msra.mxu1 %v1151_v29 }
 0x31b   : > { %v1076_v51 = vpop.permute.xlu0 %1075  ;;  %1249 = vmatprep.subr.bf16.mxu1 %v1154_v32  ;;  %v1089_v57 = vmul.f32 %v1079_v41, %v2571_v26  ;;  %v1090_v20 = vmul.f32 %v1083_v42, %v2574_v27 }
 0x31c   : > { %v1080_v46 = vsel %vm578_vm6, %v1068_v17, %v1076_v51  ;;  %v1084_v52 = vsel %vm578_vm6, %v1076_v51, %v1068_v17 }
 0x31d   : > { %v1091_v21 = vmul.f32 %v1080_v46, %v2571_v26  ;;  %v1092_v47 = vmul.f32 %v1084_v52, %v2574_v27  ;;  %v1094_v56 = vpop.permute.xlu1 %1093 }
 0x31e   : > { %1250 = vmatpush1.bf16.msra.mxu1 %v1153_v55 }
 0x31f   : > { %v1096_v7 = vpop.permute.xlu0 %1095  ;;  %v1156_v16 = vpack.c.bf16 %v1092_v47, %v1090_v20  ;;  %v1155_v60 = vpack.c.bf16 %v1091_v21, %v1089_v57  ;;  %v1761_v47 = vld [vmem:[%s3165_s4 + $0x8] sm:$0xff] }
 0x321   : > { %v1102_v9 = vpop.permute.xlu1 %1101  ;;  %1251 = vmatprep.subr.bf16.mxu1 %v1156_v16  ;;  %v1762_v16 = vld [vmem:[%s3165_s4] sm:$0xff] }
 0x322   : > { %v1109_v5 = vsel %vm624_vm7, %v1094_v56, %v1102_v9  ;;  %v1113_v24 = vsel %vm624_vm7, %v1102_v9, %v1094_v56  ;;  %1252 = vmatpush1.bf16.msra.mxu1 %v1155_v60 }
 0x323   : > { %v1104_v22 = vpop.permute.xlu0 %1103  ;;  %v1117_v45 = vmul.f32 %v1109_v5, %v2605_v0  ;;  %v1118_v44 = vmul.f32 %v1113_v24, %v2608_v2  ;;  %v1763_v5 = vld [vmem:[%s3165_s4 + $0x10] sm:$0xff] }
 0x324   : > { %v1110_v26 = vsel %vm624_vm7, %v1096_v7, %v1104_v22  ;;  %v1114_v27 = vsel %vm624_vm7, %v1104_v22, %v1096_v7 }
 0x325   : > { %v1119_v48 = vmul.f32 %v1110_v26, %v2605_v0  ;;  %v1120_v50 = vmul.f32 %v1114_v27, %v2608_v2  ;;  %v1098_v59 = vpop.permute.xlu1 %1097  ;;  %1254 = vmatmul.mubr.bf16.vlgmr.msra.gmra.mrb[0].mxu1 %v1737_v4 }
 0x326   : > { %1263 = vmatprep.mubr.bf16.mxu1 %v1740_v25 }
 0x327   : > { %v1157_v33 = vpack.c.bf16 %v1119_v48, %v1117_v45  ;;  %v1100_v12 = vpop.permute.xlu0 %1099  ;;  %v1158_v18 = vpack.c.bf16 %v1120_v50, %v1118_v44  ;;  %v1764_v44 = vld [vmem:[%s3165_s4 + $0x18] sm:$0xff] }
 0x329   : > { %v1106_v58 = vpop.permute.xlu1 %1105  ;;  %1274 = vmatprep.subr.bf16.mxu1 %v1158_v18 }
 0x32a   : > { %v1111_v40 = vsel %vm624_vm7, %v1098_v59, %v1106_v58  ;;  %v1115_v63 = vsel %vm624_vm7, %v1106_v58, %v1098_v59  ;;  %1275 = vmatpush1.bf16.msra.mxu1 %v1157_v33 }
 0x32b   : > { %v1108_v61 = vpop.permute.xlu0 %1107  ;;  %v1121_v8 = vmul.f32 %v1111_v40, %v2605_v0  ;;  %v1122_v43 = vmul.f32 %v1115_v63, %v2608_v2 }
 0x32c   : > { %v1112_v15 = vsel %vm624_vm7, %v1100_v12, %v1108_v61  ;;  %v1116_v36 = vsel %vm624_vm7, %v1108_v61, %v1100_v12 }
 0x32d   : > { %v1123_v49 = vmul.f32 %v1112_v15, %v2605_v0  ;;  %v1124_v62 = vmul.f32 %v1116_v36, %v2608_v2  ;;  %1264 = vmatmul.mubr.bf16.gmra.mrb[4].mxu1 %v1742_v10 }
 0x32e   : > { %1306 = vmatprep.mubr.bf16.mxu1 %v1946_v23 }
 0x32f   : > { %v1159_v28 = vpack.c.bf16 %v1123_v49, %v1121_v8  ;;  %v1160_v13 = vpack.c.bf16 %v1124_v62, %v1122_v43 }
 0x331   : > { %1276 = vmatprep.subr.bf16.mxu1 %v1160_v13 }
 0x332   : > { %1277 = vmatpush1.bf16.msra.mxu1 %v1159_v28 }
 0x335   : > { %1596 = vmatmul.mubr.msk.bf16.vlgmr.msra.gmra.mrb[0].mxu1 %vm748_vm8, %v1743_v6 }
 0x336   : > { %1316 = vmatprep.mubr.bf16.mxu1 %v1946_v23 }
 0x33a   : > { %v1171_v14 = vpop.permute.xlu1 %1170 }
 0x33c   : > { %v1175_v0 = vpop.permute.xlu0 %1174 }
 0x33d   : > { %1597 = vmatmul.mubr.msk.bf16.gmra.mrb[4].mxu1 %vm748_vm8, %v1744_v11 }
 0x33e   : > { %v1179_v23 = vpop.permute.xlu1 %1178 }
 0x342   : > { %v1183_v37 = vpop.permute.xlu1 %1182 }
 0x408   : > { %v1308_v34 = vpop.f32.mrb[0].mxu1 }
 0x409   : > { %v3056_v35 = vadd.f32 %v1308_v34, %v1171_v14  ;;  %v1310_v2 = vpop.f32.mrb[1].mxu1 }
 0x40a   : > { %v3058_v39 = vadd.f32 %v1310_v2, %v1171_v14  ;;  %v1312_v3 = vpop.f32.mrb[2].mxu1 }
 0x40b   : > { %v3060_v38 = vadd.f32 %v1312_v3, %v1175_v0  ;;  %v1314_v1 = vpop.f32.mrb[3].mxu1 }
 0x40c   : > { %v1327_v30 = vadd.f32 %v3058_v39, %v3056_v35  ;;  %v3064_v31 = vadd.f32 %v1314_v1, %v1175_v0 }
 0x40e   : > { %v1330_v17 = vadd.f32 %v3064_v31, %v3060_v38  ;;  %1328 = vadd.xlane.f32.xlu0 %v1327_v30 }
 0x410   : > { %v1318_v19 = vpop.f32.mrb[4].mxu1  ;;  %1331 = vadd.xlane.f32.xlu1 %v1330_v17 }
 0x411   : > { %v3068_v29 = vadd.f32 %v1318_v19, %v1179_v23  ;;  %v1320_v53 = vpop.f32.mrb[5].mxu1 }
 0x412   : > { %v3070_v54 = vadd.f32 %v1320_v53, %v1179_v23  ;;  %v1322_v32 = vpop.f32.mrb[6].mxu1 }
 0x413   : > { %v1324_v41 = vpop.f32.mrb[7].mxu1  ;;  %v3074_v51 = vadd.f32 %v1322_v32, %v1183_v37 }
 0x414   : > { %v1333_v42 = vadd.f32 %v3070_v54, %v3068_v29  ;;  %v3076_v46 = vadd.f32 %v1324_v41, %v1183_v37 }
 0x416   : > { %1334 = vadd.xlane.f32.xlu0 %v1333_v42  ;;  %v1336_v52 = vadd.f32 %v3076_v46, %v3074_v51 }
 0x41a   : > { %1337 = vadd.xlane.f32.xlu0 %v1336_v52 }
 0x49b   : > { %v1329_v55 = vpop.xlane.xlu0 %1328 }
 0x49c   : > { %v1340_v21 = vmul.f32 0.00390625, %v1329_v55 }
 0x49d   : > { %v1332_v57 = vpop.xlane.xlu1 %1331 }
 0x49e   : > { %v1341_v20 = vmul.f32 0.00390625, %v1332_v57  ;;  %v1344_v60 = vmul.f32 %v1762_v16, %v1340_v21 }
 0x4a0   : > { %v1345_v56 = vmul.f32 %v1761_v47, %v1341_v20  ;;  %v1349_v22 = vsel %vm1348_vm9, %v1344_v60, 0.0 }
 0x4a2   : > { %v1350_v4 = vsel %vm1348_vm9, %v1345_v56, 0.0 }
 0x4a3   : > { %v1335_v7 = vpop.xlane.xlu0 %1334  ;;  %v1351_v45 = vadd.f32 %v1350_v4, %v1349_v22  ;;  %v1767_v22 = vld [vmem:[%s2160_s6 + $0x10] sm:$0xff] }
 0x4a4   : > { %v1342_v9 = vmul.f32 0.00390625, %v1335_v7 }
 0x4a6   : > { %v1346_v24 = vmul.f32 %v1763_v5, %v1342_v9  ;;  %v1765_v9 = vld [vmem:[%s2160_s6] sm:$0xff] }
 0x4a7   : > { %v1338_v25 = vpop.xlane.xlu0 %1337 }
 0x4a8   : > { %v1352_v26 = vsel %vm1348_vm9, %v1346_v24, 0.0  ;;  %v1343_v27 = vmul.f32 0.00390625, %v1338_v25 }
 0x4a9   : > { %v1353_v50 = vadd.f32 %v1352_v26, %v1351_v45 }
 0x4aa   : > { %v1347_v48 = vmul.f32 %v1764_v44, %v1343_v27  ;;  %v1768_v27 = vld [vmem:[%s2160_s6 + $0x18] sm:$0xff] }
 0x4ac   : > { %v1354_v59 = vsel %vm1348_vm9, %v1347_v48, 0.0 }
 0x4ad   : > { %v1355_v33 = vadd.f32 %v1354_v59, %v1353_v50 }
 0x4af   : > { %v1356_v12 = vrot.slane %v1355_v33, 4 }
 0x4b1   : > { %v1357_v18 = vadd.f32 %v1356_v12, %v1355_v33  ;;  %v1769_v12 = vld [vmem:[%s2160_s6 + $0x30] sm:$0xff] }
 0x4b3   : > { %v1358_v58 = vrot.slane %v1357_v18, 2 }
 0x4b5   : > { %v1359_v10 = vadd.f32 %v1358_v58, %v1357_v18  ;;  %v1770_v58 = vld [vmem:[%s2160_s6 + $0x38] sm:$0xff] }
 0x4b7   : > { %v1360_v40 = vrot.slane %v1359_v10, 1 }
 0x4b9   : > { %v1361_v63 = vadd.f32 %v1360_v40, %v1359_v10  ;;  %v1772_v40 = vld [vmem:[%s2160_s6 + $0x28] sm:$0xff] }
 0x4bb   : > { %v1362_v61 = vmax.f32 %v1361_v63, 0.0 }
 0x4bd   : > { %1364 = vrot.lane.b32.xlu1 %v1362_v61, %s1948_s9 }
 0x52f   : > { %v1365_v15 = vpop.permute.xlu1 %1364 }
 0x530   : > { %v1367_v36 = vmul.f32 %v1762_v16, %v1365_v15  ;;  %v1368_v8 = vmul.f32 %v1761_v47, %v1365_v15  ;;  %v1369_v43 = vmul.f32 %v1763_v5, %v1365_v15  ;;  %v1370_v49 = vmul.f32 %v1764_v44, %v1365_v15  ;;  %v1766_v5 = vld [vmem:[%s2160_s6 + $0x8] sm:$0xff] }
 0x532   : > { %1377 = vrot.lane.b32.xlu1 %v1368_v8, %s1949_s12  ;;  %1375 = vrot.lane.b32.xlu0 %v1367_v36, %s1949_s12 }
 0x536   : > { %1379 = vrot.lane.b32.xlu1 %v1369_v43, %s1949_s12  ;;  %1381 = vrot.lane.b32.xlu0 %v1370_v49, %s1949_s12 }
 0x5a4   : > { %v1378_v62 = vpop.permute.xlu1 %1377  ;;  %v1376_v28 = vpop.permute.xlu0 %1375 }
 0x5a5   : > { %v1391_v13 = vsel %vm1387_vm10, %v1378_v62, 0.0  ;;  %v1388_v6 = vsel %vm1387_vm10, %v1376_v28, 0.0 }
 0x5a6   : > { %1392 = vadd.xlane.f32.xlu0 %v1391_v13  ;;  %1389 = vadd.xlane.f32.xlu1 %v1388_v6 }
 0x5a8   : > { %v1380_v11 = vpop.permute.xlu1 %1379  ;;  %v1382_v14 = vpop.permute.xlu0 %1381 }
 0x5a9   : > { %v1394_v34 = vsel %vm1387_vm10, %v1380_v11, 0.0  ;;  %v1397_v0 = vsel %vm1387_vm10, %v1382_v14, 0.0 }
 0x5aa   : > { %1395 = vadd.xlane.f32.xlu0 %v1394_v34  ;;  %1398 = vadd.xlane.f32.xlu1 %v1397_v0 }
 0x633   : > { %v1390_v2 = vpop.xlane.xlu1 %1389  ;;  %v1393_v3 = vpop.xlane.xlu0 %1392 }
 0x634   : > { %v1598_v1 = vmul.f32 -1.442695, %v1390_v2  ;;  %v1599_v30 = vmul.f32 -1.442695, %v1393_v3 }
 0x636   : > { %1745 = vpow2.f32 %v1598_v1 }
 0x637   : > { %1747 = vpow2.f32 %v1599_v30  ;;  %v1399_v23 = vpop.xlane.xlu1 %1398  ;;  %v1396_v17 = vpop.xlane.xlu0 %1395 }
 0x638   : > { %v1601_v19 = vmul.f32 -1.442695, %v1399_v23  ;;  %v1600_v53 = vmul.f32 -1.442695, %v1396_v17 }
 0x63a   : > { %1749 = vpow2.f32 %v1601_v19 }
 0x63b   : > { %1751 = vpow2.f32 %v1600_v53 }
 0x640   : > { %v1746_v32 = vpop.eup %1745 }
 0x641   : > { %v1748_v37 = vpop.eup %1747  ;;  %v1412_v41 = vadd.f32 1.0, %v1746_v32 }
 0x642   : > { %v1413_v42 = vadd.f32 1.0, %v1748_v37 }
 0x643   : > { %1753 = vrcp.f32 %v1412_v41 }
 0x644   : > { %v1750_v52 = vpop.eup %1749  ;;  %1755 = vrcp.f32 %v1413_v42 }
 0x645   : > { %v1752_v55 = vpop.eup %1751  ;;  %v1415_v57 = vadd.f32 1.0, %v1750_v52 }
 0x646   : > { %v1414_v20 = vadd.f32 1.0, %v1752_v55 }
 0x647   : > { %1757 = vrcp.f32 %v1415_v57 }
 0x648   : > { %1759 = vrcp.f32 %v1414_v20 }
 0x64d   : > { %v1754_v21 = vpop.eup %1753 }
 0x64e   : > { %v1756_v47 = vpop.eup %1755  ;;  %v1424_v56 = vmul.f32 %v1754_v21, %v3056_v35  ;;  %v1425_v7 = vmul.f32 %v1754_v21, %v3058_v39 }
 0x64f   : > { %v1426_v16 = vmul.f32 %v1756_v47, %v3060_v38  ;;  %v1427_v60 = vmul.f32 %v1756_v47, %v3064_v31 }
 0x650   : > { %v1432_v4 = vadd.f32 %v1765_v9, %v1424_v56  ;;  %v1433_v24 = vadd.f32 %v1766_v5, %v1425_v7 }
 0x651   : > { %v1758_v25 = vpop.eup %1757  ;;  %v1434_v26 = vadd.f32 %v1767_v22, %v1426_v16  ;;  %v1435_v45 = vadd.f32 %v1768_v27, %v1427_v60 }
 0x652   : > { %v1760_v35 = vpop.eup %1759  ;;  %v1440_v44 = vmax.f32 %v1432_v4, 0.0  ;;  %v1441_v39 = vmax.f32 %v1433_v24, 0.0  ;;  %v1430_v38 = vmul.f32 %v1758_v25, %v3074_v51  ;;  %v1431_v31 = vmul.f32 %v1758_v25, %v3076_v46  ;;  %v1771_v51 = vld [vmem:[%s2160_s6 + $0x20] sm:$0xff]  ;;  %s1457_s6 = scalar_lea.sflag [#allocation4], %s2154_s29 }
 0x653   : > { %v1442_v48 = vmax.f32 %v1434_v26, 0.0  ;;  %v1443_v50 = vmax.f32 %v1435_v45, 0.0  ;;  %v1428_v59 = vmul.f32 %v1760_v35, %v3068_v29  ;;  %v1429_v33 = vmul.f32 %v1760_v35, %v3070_v54 }
 0x654   : > { %1448 = vst [vmem:[%s271_s16] sm:$0xff] %v1440_v44  ;;  %1449 = vst [vmem:[%s271_s16 + $0x8] sm:$0xff] %v1441_v39  ;;  %v1438_v18 = vadd.f32 %v1769_v12, %v1430_v38  ;;  %v1439_v10 = vadd.f32 %v1770_v58, %v1431_v31 }
 0x655   : > { %1450 = vst [vmem:[%s271_s16 + $0x10] sm:$0xff] %v1442_v48  ;;  %1451 = vst [vmem:[%s271_s16 + $0x18] sm:$0xff] %v1443_v50  ;;  %v1436_v46 = vadd.f32 %v1771_v51, %v1428_v59  ;;  %v1437_v29 = vadd.f32 %v1772_v40, %v1429_v33 }
 0x656   : > { %v1446_v63 = vmax.f32 %v1438_v18, 0.0  ;;  %v1447_v54 = vmax.f32 %v1439_v10, 0.0 }
 0x657   : > { %v1444_v61 = vmax.f32 %v1436_v46, 0.0  ;;  %v1445_v15 = vmax.f32 %v1437_v29, 0.0 }
 0x658   : > { %1454 = vst [vmem:[%s271_s16 + $0x30] sm:$0xff] %v1446_v63  ;;  %1455 = vst [vmem:[%s271_s16 + $0x38] sm:$0xff] %v1447_v54 }
 0x659   : > { %1452 = vst [vmem:[%s271_s16 + $0x20] sm:$0xff] %v1444_v61  ;;  %1453 = vst [vmem:[%s271_s16 + $0x28] sm:$0xff] %v1445_v15 }
 0x65a   : > { %1872 = shalt.err (!%p1869_p2)
}
 0x65b   : > { %s1873_s17 = scalar_lea.hbm %s3114_s10, 1024  ;;  %s1877_s13 = scalar_lea.hbm %s3166_s5, 2048 }
 0x65c   : > { %p1874_p13 = scmp.ne.s32.totalorder %s3114_s10, %s1873_s17  ;;  %p1878_p4 = scmp.lt.u32.totalorder %s3114_s10, %s3166_s5 }
 0x65d   : > { %p1879_p5 = scmp.lt.u32.totalorder %s1877_s13, %s1873_s17  ;;  %p1881_p11 = scmp.lt.u32.totalorder %s1873_s17, %s3114_s10 }
 0x65e   : > { %p1875_p6 = pnand %p1874_p13, %p3182_p0 }
 0x65f   : > { %p1880_p8 = por %p1879_p5, %p1878_p4 }
 0x660   : > { %p1876_p10 = pneg %p1875_p6 }
 0x661   : > { %p1882_p1 = por %p1881_p11, %p1880_p8 }
 0x663   : > { %p1883_p3 = pnand %p1882_p1, %p1876_p10 }
 0x665   : > { %1886 = shalt.err (!%p1883_p3)
}
 0x666   : > { %s1951_s22 = smov 256  }
 0x667   : > { %1651 = dma.vmem_to_hbm [thread:$0]  (%p3182_p0), %s3116_s24, 1024, %s3114_s10, %s1457_s6, %s1951_s22, %s1951_s22, %s1939_s26  }
 0x668 PF: > { %s1485_s8 = sand.u32 1, %s1917_s18   ;;  %p3183_p7 = scmp.ne.s32.totalorder %s3172_s25, 0 }
 0x669   : > { %p3184_p9 = scmp.ge.s32.totalorder %s1929_s21, 2  ;;  %s1486_s11 = scalar_lea.sflag [#allocation4], %s1485_s8 }
 0x66b   : > { %p1665_p12 = pnand %p3184_p9, %p3183_p7 }
 0x66d   : > { %1912 = dma.done.wait (!%p1665_p12), %s1486_s11, 1024  }
 0x66e   : > { %1914 = vsyncadd (!%p1665_p12), %s1486_s11, 4294966272  ;;  %p19_p2 = scmp.ge.s32.totalorder %s2092_s14, 4   ;;  %s3185_s18 = smov %s1921_s19 }
 0x66f   : > { %s3186_s19 = smov %s1925_s20  ;;  %s3187_s20 = smov %s2108_s27 }
 0x670   : > { %s3188_s21 = smov %s2092_s14  ;;  %21 = sbr.rel (!%p19_p2) target bundleno = 6 (0x6), region = 100 }
 0x677   :  { %1491 = vsyncpa [#allocation3], 1 }
 0x678   :  { %1493 = vsyncpa [#allocation3 + $0x1], 1 }
 0x679   :  { %1494 = vsyncpa [#allocation6], 1 }
 0x67a   :  { %1495 = vsyncpa [#allocation4], 1 }
 0x67b   :  { %1497 = vsyncpa [#allocation4 + $0x1], 1 }

</bundles_post_ra>
